<compile_context>
chip_gen: v7x
topology: tpu7x:2x2x1
jax: 0.10.0
libtpu: 0.0.40
codegen_flags: <defaults>
</compile_context>

<pallas_src>
import functools
import math

import jax
import jax.numpy as jnp
from jax import lax
from jax.experimental import pallas as pl
from jax.experimental.pallas import tpu as pltpu


def _gelu_exact(v):
    # Exact erf form — matches torch.nn.GELU() default.
    return 0.5 * v * (1.0 + lax.erf(v * (1.0 / math.sqrt(2.0))))


def _gelu_tanh(v):
    # Optional tanh approximation (rides the EUP slot on v6e/v7x).
    c = math.sqrt(2.0 / math.pi)
    return 0.5 * v * (1.0 + jnp.tanh(c * (v + 0.044715 * v * v * v)))


def _residual_block_kernel(x_ref, w1_ref, w2_ref, vec_ref, o_ref, xp_ref,
                           *col_scratch, k, pad, eps, compute_dtype,
                           use_im2col, approx_gelu):
    """One batch tile per grid step; batch folded into the matmul N dimension.

    x_ref   : (Bt, C, L)             input tile (f32)
    w*_ref  : (C, K*C)               conv weights, (tap, in-chan)-major cols, compute dtype
    vec_ref : (C, 8)                 packed [b1, g1, be1, b2, g2, be2, 0, 0] (f32)
    o_ref   : (Bt, C, L)             output tile
    xp_ref  : (C, Bt*Lp + 2*pad)     zero-haloed staging slab, Lp = L + 2*pad (compute dtype)
    col_ref : (K*C, Bt*Lp)           im2col slab (only when use_im2col)
    """
    bt, c, l = x_ref.shape
    lp = l + 2 * pad
    n = bt * lp
    inv_nelem = 1.0 / float(c * l)
    gelu = _gelu_tanh if approx_gelu else _gelu_exact

    col_ref = col_scratch[0] if use_im2col else None

    vec = vec_ref[...]
    b1, g1, be1 = vec[:, 0:1], vec[:, 1:2], vec[:, 2:3]
    b2, g2, be2 = vec[:, 3:4], vec[:, 4:5], vec[:, 5:6]

    # Zero ONLY the halo columns of the staging slab (interiors are fully
    # rewritten for every layer, so the halos stay zero for both convs).
    if pad > 0:
        zpad = jnp.zeros((c, pad), xp_ref.dtype)
        xp_ref[:, pl.ds(0, pad)] = zpad
        xp_ref[:, pl.ds(n + pad, pad)] = zpad
        zgap = jnp.zeros((c, 2 * pad), xp_ref.dtype)
        for b in range(bt):                      # static, small
            xp_ref[:, pl.ds(b * lp + pad + l, 2 * pad)] = zgap

    def conv(w_ref, bias):
        """Batch-folded 'same' Conv1d over the whole slab.

        Columns [b*Lp, b*Lp + L) of the (C, Bt*Lp) result hold sample b's conv
        output; the trailing 2*pad columns of each segment span a sample
        boundary and are garbage, ignored downstream."""
        if use_im2col:
            for t in range(k):                   # static, unrolled taps
                col_ref[pl.ds(t * c, c), :] = xp_ref[:, pl.ds(t, n)]
            y = jnp.dot(w_ref[...], col_ref[...],
                        preferred_element_type=jnp.float32)     # (C, N) f32
        else:
            # Large C: contraction=C already fills the MXU; skip the im2col
            # materialization and accumulate K shifted-view matmuls.
            y = jnp.dot(w_ref[:, 0:c], xp_ref[:, pl.ds(0, n)],
                        preferred_element_type=jnp.float32)
            for t in range(1, k):
                y = y + jnp.dot(w_ref[:, t * c:(t + 1) * c],
                                xp_ref[:, pl.ds(t, n)],
                                preferred_element_type=jnp.float32)
        return y + bias                                          # per-channel bias

    def group_norm(y_b, g, be):
        """GroupNorm(1, C) on one sample's (C, L) slice: scalar mean/var,
        fused with the affine into a per-channel scale/shift (biased var)."""
        mean = jnp.sum(y_b) * inv_nelem
        var = jnp.maximum(jnp.sum(y_b * y_b) * inv_nelem - mean * mean, 0.0)
        scale = g * lax.rsqrt(var + eps)          # (C, 1)
        shift = be - mean * scale                 # (C, 1)
        return y_b * scale + shift

    # ---- layer 1: stage x -> conv -> per-sample GN + GELU -> re-stage -------
    for b in range(bt):
        xp_ref[:, pl.ds(b * lp + pad, l)] = x_ref[b].astype(compute_dtype)
    y1 = conv(w1_ref, b1)
    for b in range(bt):
        h1 = gelu(group_norm(y1[:, b * lp:b * lp + l], g1, be1))
        xp_ref[:, pl.ds(b * lp + pad, l)] = h1.astype(compute_dtype)

    # ---- layer 2: conv -> per-sample GN -> residual add + final GELU --------
    y2 = conv(w2_ref, b2)
    for b in range(bt):
        h2 = group_norm(y2[:, b * lp:b * lp + l], g2, be2)
        # Dropout(p=0.0) is the identity.  Identity branch re-read from x_ref.
        o_ref[b] = gelu(x_ref[b].astype(jnp.float32) + h2).astype(o_ref.dtype)


def _choose_batch_tile(batch, c, l, k, pad, vmem_cap, use_im2col):
    """Largest divisor of `batch` whose VMEM estimate fits, keeping >= 2 grid
    steps (v7x has 2 TensorCores sharded over the 'parallel' axis)."""
    lp = l + 2 * pad
    best = 1
    for bt in range(1, batch + 1):
        if batch % bt:
            continue
        if batch >= 2 and bt > batch // 2:       # keep grid length >= 2
            break
        n = bt * lp
        est = (4 * bt * c * l * 4                       # in + out tiles, 2 buffers, f32
               + 4 * c * (k * c) * 2                    # two bf16 weights, 2 buffers
               + 2 * c * 128 * 4                        # packed vectors (lane-rounded)
               + c * (n + 2 * pad) * 2                  # xp staging scratch
               + (k * c * n * 2 if use_im2col else 0))  # im2col scratch
        if est > 0.55 * vmem_cap:
            break
        best = bt
        if n >= 1024:                            # MXU N dimension already well filled
            break
    return best


def residual_block(x, w1, b1, g1, beta1, w2, b2, g2, beta2, *,
                   kernel_size=3, eps=1e-5, compute_dtype=jnp.bfloat16,
                   batch_tile=None, approx_gelu=False):
    """ResidualBlock forward.  x: (B, C, L) f32; conv weights: (C, C, K); vectors: (C,)."""
    B, C, L = x.shape
    K = kernel_size
    assert K % 2 == 1, "only odd kernel_size supported (residual add requires same L)"
    pad = (K - 1) // 2
    use_im2col = C < 128                         # large C: shifted-view matmuls instead

    try:
        vmem_cap = int(pltpu.get_tpu_info().vmem_capacity_bytes)
    except Exception:
        vmem_cap = 64 * 1024 * 1024              # v7x-sized fallback, safe everywhere

    if batch_tile is None:
        batch_tile = _choose_batch_tile(B, C, L, K, pad, vmem_cap, use_im2col)
    assert B % batch_tile == 0, "batch_tile must divide batch"
    lp = L + 2 * pad
    n = batch_tile * lp

    def prep_w(w):
        # (Cout, Cin, K) -> (Cout, K*Cin), columns ordered (tap, in-channel).
        return jnp.transpose(w, (0, 2, 1)).reshape(C, K * C).astype(compute_dtype)

    zeros_c = jnp.zeros((C,), jnp.float32)
    vecs = jnp.stack([b1, g1, beta1, b2, g2, beta2, zeros_c, zeros_c],
                     axis=1).astype(jnp.float32)                  # (C, 8)

    kernel = functools.partial(_residual_block_kernel, k=K, pad=pad, eps=eps,
                               compute_dtype=compute_dtype,
                               use_im2col=use_im2col, approx_gelu=approx_gelu)

    batch_spec = pl.BlockSpec((batch_tile, C, L), lambda g: (g, 0, 0))
    scratch = [pltpu.VMEM((C, n + 2 * pad), compute_dtype)]       # staging slab
    if use_im2col:
        scratch.append(pltpu.VMEM((K * C, n), compute_dtype))     # im2col slab

    def build(single_buffer_consts):
        extra = {"pipeline_mode": pl.Buffered(1)} if single_buffer_consts else {}

        def const_spec(shape):
            return pl.BlockSpec(shape, lambda g: (0, 0), **extra)

        return pl.pallas_call(
            kernel,
            out_shape=jax.ShapeDtypeStruct((B, C, L), x.dtype),
            grid_spec=pltpu.PrefetchScalarGridSpec(
                num_scalar_prefetch=0,
                grid=(B // batch_tile,),
                in_specs=[
                    batch_spec,                       # x
                    const_spec((C, K * C)),           # conv1 weight
                    const_spec((C, K * C)),           # conv2 weight
                    const_spec((C, 8)),               # packed bias/gamma/beta
                ],
                out_specs=batch_spec,
                scratch_shapes=scratch,
            ),
            compiler_params=pltpu.CompilerParams(
                dimension_semantics=("parallel",),
                vmem_limit_bytes=int(0.75 * vmem_cap),
            ),
        )

    wm1, wm2 = prep_w(w1), prep_w(w2)
    try:
        return build(True)(x, wm1, wm2, vecs)
    except Exception:
        # pl.Buffered(1) rejected on this jax version -> default double buffering.
        return build(False)(x, wm1, wm2, vecs)


def _reference(x, w1, b1, g1, beta1, w2, b2, g2, beta2, *,
               kernel_size=3, eps=1e-5, compute_dtype=jnp.bfloat16):
    """Pure-JAX reference of the same forward pass (bf16 conv operands, f32 accum)."""
    pad = (kernel_size - 1) // 2

    def conv_gn(h, w, b, g, be):
        y = lax.conv_general_dilated(
            h.astype(compute_dtype), w.astype(compute_dtype),
            window_strides=(1,), padding=[(pad, pad)],
            dimension_numbers=('NCH', 'OIH', 'NCH'),
            preferred_element_type=jnp.float32)
        y = y + b[None, :, None]
        mean = y.mean(axis=(1, 2), keepdims=True)
        var = y.var(axis=(1, 2), keepdims=True)
        yn = (y - mean) * lax.rsqrt(var + eps)
        return yn * g[None, :, None] + be[None, :, None]

    h1 = _gelu_exact(conv_gn(x, w1, b1, g1, beta1))
    h2 = conv_gn(h1, w2, b2, g2, beta2)
    return _gelu_exact(x + h2)


def _check(key, B, C, L, K, random_affine):
    kx, kw1, kw2, kv = jax.random.split(key, 4)
    x = jax.random.normal(kx, (B, C, L), jnp.float32)

    # Match the module's _init_weights: kaiming_normal_(mode='fan_out',
    # nonlinearity='relu') -> std = sqrt(2 / (Cout*K)).
    std = math.sqrt(2.0 / (C * K))
    w1 = jax.random.normal(kw1, (C, C, K), jnp.float32) * std
    w2 = jax.random.normal(kw2, (C, C, K), jnp.float32) * std
    if random_affine:
        v = jax.random.normal(kv, (6, C), jnp.float32) * 0.2
        b1, be1, b2, be2 = v[0], v[1], v[2], v[3]
        g1, g2 = 1.0 + v[4], 1.0 + v[5]
    else:  # module defaults: conv bias zeros, GroupNorm weight=1 / bias=0
        b1 = be1 = b2 = be2 = jnp.zeros((C,), jnp.float32)
        g1 = g2 = jnp.ones((C,), jnp.float32)

    args = (x, w1, b1, g1, be1, w2, b2, g2, be2)
    out = jax.block_until_ready(residual_block(*args, kernel_size=K))
    ref = _reference(*args, kernel_size=K)

    assert out.shape == (B, C, L), f"bad output shape {out.shape}"
    max_err = float(jnp.max(jnp.abs(out - ref)))
    # Tolerance covers bf16 MXU operands / double-rounding of the intermediate
    # activation; structural bugs would show errors O(0.1) or larger.
    assert jnp.allclose(out, ref, atol=2e-2, rtol=2e-2), (
        f"mismatch vs JAX reference at (B,C,L,K)=({B},{C},{L},{K}) "
        f"(max abs err {max_err:.3e})")


if __name__ == "__main__":
    key = jax.random.PRNGKey(0)
    k1, k2 = jax.random.split(key)

    # Small case from the module spec (B=2, C=4, L=16): two grid steps, bt=1.
    _check(k1, B=2, C=4, L=16, K=3, random_affine=False)
    # Slightly larger case: exercises batch folding (bt=2), multiple grid
    # steps, and non-default bias / GroupNorm affine values.
    _check(k2, B=4, C=8, L=24, K=3, random_affine=True)

    print("KERNEL_OK")
</pallas_src>

<mosaic_0001>
module attributes {stable_mosaic.version = 11 : i64} {
  func.func @_residual_block_kernel(%arg0: i32, %arg1: memref<1x4x16xf32, #tpu.memory_space<vmem>>, %arg2: memref<4x12xbf16, #tpu.memory_space<vmem>>, %arg3: memref<4x12xbf16, #tpu.memory_space<vmem>>, %arg4: memref<4x8xf32, #tpu.memory_space<vmem>>, %arg5: memref<1x4x16xf32, #tpu.memory_space<vmem>>, %arg6: memref<4x20xbf16, #tpu.memory_space<vmem>>, %arg7: memref<12x18xbf16, #tpu.memory_space<vmem>>) attributes {dimension_semantics = [#tpu.dimension_semantics<parallel>], iteration_bounds = array<i64: 2>, scalar_prefetch = 0 : i64, scratch_operands = 2 : i64, tpu.core_type = #tpu.core_type<tc>, window_params = [{transform_indices = @transform_0, window_bounds = array<i64: 1, 4, 16>}, {pipeline_mode = #tpu.pipeline_mode<synchronous>, transform_indices = @transform_1, window_bounds = array<i64: 4, 12>}, {pipeline_mode = #tpu.pipeline_mode<synchronous>, transform_indices = @transform_2, window_bounds = array<i64: 4, 12>}, {pipeline_mode = #tpu.pipeline_mode<synchronous>, transform_indices = @transform_3, window_bounds = array<i64: 4, 8>}, {transform_indices = @transform_4, window_bounds = array<i64: 1, 4, 16>}]} {
    %c0 = arith.constant 0 : index
    %c0_0 = arith.constant 0 : index
    %0 = vector.load %arg4[%c0, %c0_0] : memref<4x8xf32, #tpu.memory_space<vmem>>, vector<4x8xf32>
    %1 = vector.extract_strided_slice %0 {offsets = [0, 0], sizes = [4, 1], strides = [1, 1]} : vector<4x8xf32> to vector<4x1xf32>
    %2 = vector.extract_strided_slice %0 {offsets = [0, 1], sizes = [4, 1], strides = [1, 1]} : vector<4x8xf32> to vector<4x1xf32>
    %3 = vector.extract_strided_slice %0 {offsets = [0, 2], sizes = [4, 1], strides = [1, 1]} : vector<4x8xf32> to vector<4x1xf32>
    %4 = vector.extract_strided_slice %0 {offsets = [0, 3], sizes = [4, 1], strides = [1, 1]} : vector<4x8xf32> to vector<4x1xf32>
    %5 = vector.extract_strided_slice %0 {offsets = [0, 4], sizes = [4, 1], strides = [1, 1]} : vector<4x8xf32> to vector<4x1xf32>
    %6 = vector.extract_strided_slice %0 {offsets = [0, 5], sizes = [4, 1], strides = [1, 1]} : vector<4x8xf32> to vector<4x1xf32>
    %cst = arith.constant 0.000000e+00 : bf16
    %7 = vector.broadcast %cst : bf16 to vector<4x1xbf16>
    %c0_1 = arith.constant 0 : index
    %c0_2 = arith.constant 0 : index
    %8 = vector.load %arg6[%c0_1, %c0_2] : memref<4x20xbf16, #tpu.memory_space<vmem>>, vector<4x1xbf16>
    tpu.vector_store %arg6[%c0_1, %c0_2], %7 {strides = array<i32>} : memref<4x20xbf16, #tpu.memory_space<vmem>>, vector<4x1xbf16>,
    %c0_3 = arith.constant 0 : index
    %c19 = arith.constant 19 : index
    %9 = vector.load %arg6[%c0_3, %c19] : memref<4x20xbf16, #tpu.memory_space<vmem>>, vector<4x1xbf16>
    tpu.vector_store %arg6[%c0_3, %c19], %7 {strides = array<i32>} : memref<4x20xbf16, #tpu.memory_space<vmem>>, vector<4x1xbf16>,
    %cst_4 = arith.constant 0.000000e+00 : bf16
    %10 = vector.broadcast %cst_4 : bf16 to vector<4x2xbf16>
    %c0_5 = arith.constant 0 : index
    %c17 = arith.constant 17 : index
    %11 = vector.load %arg6[%c0_5, %c17] : memref<4x20xbf16, #tpu.memory_space<vmem>>, vector<4x2xbf16>
    tpu.vector_store %arg6[%c0_5, %c17], %10 {strides = array<i32>} : memref<4x20xbf16, #tpu.memory_space<vmem>>, vector<4x2xbf16>,
    %c0_6 = arith.constant 0 : index
    %c0_7 = arith.constant 0 : index
    %c0_8 = arith.constant 0 : index
    %12 = vector.load %arg1[%c0_6, %c0_7, %c0_8] : memref<1x4x16xf32, #tpu.memory_space<vmem>>, vector<1x4x16xf32>
    %13 = vector.shape_cast %12 : vector<1x4x16xf32> to vector<4x16xf32>
    %14 = arith.truncf %13 : vector<4x16xf32> to vector<4x16xbf16>
    %c0_9 = arith.constant 0 : index
    %c1 = arith.constant 1 : index
    %15 = vector.load %arg6[%c0_9, %c1] : memref<4x20xbf16, #tpu.memory_space<vmem>>, vector<4x16xbf16>
    tpu.vector_store %arg6[%c0_9, %c1], %14 {strides = array<i32>} : memref<4x20xbf16, #tpu.memory_space<vmem>>, vector<4x16xbf16>,
    %c0_10 = arith.constant 0 : index
    %c0_11 = arith.constant 0 : index
    %16 = vector.load %arg6[%c0_10, %c0_11] : memref<4x20xbf16, #tpu.memory_space<vmem>>, vector<4x18xbf16>
    %c0_12 = arith.constant 0 : index
    %c0_13 = arith.constant 0 : index
    %17 = vector.load %arg7[%c0_12, %c0_13] : memref<12x18xbf16, #tpu.memory_space<vmem>>, vector<4x18xbf16>
    tpu.vector_store %arg7[%c0_12, %c0_13], %16 {strides = array<i32>} : memref<12x18xbf16, #tpu.memory_space<vmem>>, vector<4x18xbf16>,
    %c0_14 = arith.constant 0 : index
    %c1_15 = arith.constant 1 : index
    %18 = vector.load %arg6[%c0_14, %c1_15] : memref<4x20xbf16, #tpu.memory_space<vmem>>, vector<4x18xbf16>
    %c4 = arith.constant 4 : index
    %c0_16 = arith.constant 0 : index
    %19 = vector.load %arg7[%c4, %c0_16] : memref<12x18xbf16, #tpu.memory_space<vmem>>, vector<4x18xbf16>
    tpu.vector_store %arg7[%c4, %c0_16], %18 {strides = array<i32>} : memref<12x18xbf16, #tpu.memory_space<vmem>>, vector<4x18xbf16>,
    %c0_17 = arith.constant 0 : index
    %c2 = arith.constant 2 : index
    %20 = vector.load %arg6[%c0_17, %c2] : memref<4x20xbf16, #tpu.memory_space<vmem>>, vector<4x18xbf16>
    %c8 = arith.constant 8 : index
    %c0_18 = arith.constant 0 : index
    %21 = vector.load %arg7[%c8, %c0_18] : memref<12x18xbf16, #tpu.memory_space<vmem>>, vector<4x18xbf16>
    tpu.vector_store %arg7[%c8, %c0_18], %20 {strides = array<i32>} : memref<12x18xbf16, #tpu.memory_space<vmem>>, vector<4x18xbf16>,
    %c0_19 = arith.constant 0 : index
    %c0_20 = arith.constant 0 : index
    %22 = vector.load %arg2[%c0_19, %c0_20] : memref<4x12xbf16, #tpu.memory_space<vmem>>, vector<4x12xbf16>
    %c0_21 = arith.constant 0 : index
    %c0_22 = arith.constant 0 : index
    %23 = vector.load %arg7[%c0_21, %c0_22] : memref<12x18xbf16, #tpu.memory_space<vmem>>, vector<12x18xbf16>
    %cst_23 = arith.constant dense<0.000000e+00> : vector<4x18xf32>
    %24 = tpu.matmul %22, %23, %cst_23 {dimension_numbers = #tpu.dot_dimension_numbers<[1], [0], [0], [1], [0, 0, 1, 1], [], []>} : vector<4x12xbf16>, vector<12x18xbf16>, vector<4x18xf32> -> vector<4x18xf32>
    %25 = vector.broadcast %1 : vector<4x1xf32> to vector<4x18xf32>
    %26 = arith.addf %24, %25 : vector<4x18xf32>
    %27 = vector.extract_strided_slice %26 {offsets = [0, 0], sizes = [4, 16], strides = [1, 1]} : vector<4x18xf32> to vector<4x16xf32>
    %28 = vector.shape_cast %27 : vector<4x16xf32> to vector<1x4x16xf32>
    %cst_24 = arith.constant dense<0.000000e+00> : vector<1xf32>
    %29 = vector.multi_reduction <add>, %28, %cst_24 [1, 2] : vector<1x4x16xf32> to vector<1xf32>
    %30 = vector.shape_cast %29 : vector<1xf32> to vector<1x1x1xf32>
    %31 = vector.extract %30[0, 0, 0] : f32 from vector<1x1x1xf32>
    %cst_25 = arith.constant 1.562500e-02 : f32
    %32 = arith.mulf %31, %cst_25 : f32
    %33 = arith.mulf %27, %27 : vector<4x16xf32>
    %34 = vector.shape_cast %33 : vector<4x16xf32> to vector<1x4x16xf32>
    %cst_26 = arith.constant dense<0.000000e+00> : vector<1xf32>
    %35 = vector.multi_reduction <add>, %34, %cst_26 [1, 2] : vector<1x4x16xf32> to vector<1xf32>
    %36 = vector.shape_cast %35 : vector<1xf32> to vector<1x1x1xf32>
    %37 = vector.extract %36[0, 0, 0] : f32 from vector<1x1x1xf32>
    %cst_27 = arith.constant 1.562500e-02 : f32
    %38 = arith.mulf %37, %cst_27 : f32
    %39 = arith.mulf %32, %32 : f32
    %40 = arith.subf %38, %39 : f32
    %cst_28 = arith.constant 0.000000e+00 : f32
    %41 = arith.maximumf %40, %cst_28 : f32
    %cst_29 = arith.constant 9.99999974E-6 : f32
    %42 = arith.addf %41, %cst_29 : f32
    %43 = math.rsqrt %42 : f32
    %44 = vector.broadcast %43 : f32 to vector<4x1xf32>
    %45 = arith.mulf %2, %44 : vector<4x1xf32>
    %46 = vector.broadcast %32 : f32 to vector<4x1xf32>
    %47 = arith.mulf %46, %45 : vector<4x1xf32>
    %48 = arith.subf %3, %47 : vector<4x1xf32>
    %49 = vector.broadcast %45 : vector<4x1xf32> to vector<4x16xf32>
    %50 = arith.mulf %27, %49 : vector<4x16xf32>
    %51 = vector.broadcast %48 : vector<4x1xf32> to vector<4x16xf32>
    %52 = arith.addf %50, %51 : vector<4x16xf32>
    %cst_30 = arith.constant 5.000000e-01 : f32
    %53 = vector.broadcast %cst_30 : f32 to vector<4x16xf32>
    %54 = arith.mulf %53, %52 : vector<4x16xf32>
    %cst_31 = arith.constant 0.707106769 : f32
    %55 = vector.broadcast %cst_31 : f32 to vector<4x16xf32>
    %56 = arith.mulf %52, %55 : vector<4x16xf32>
    %57 = math.erf %56 : vector<4x16xf32>
    %cst_32 = arith.constant 1.000000e+00 : f32
    %58 = vector.broadcast %cst_32 : f32 to vector<4x16xf32>
    %59 = arith.addf %58, %57 : vector<4x16xf32>
    %60 = arith.mulf %54, %59 : vector<4x16xf32>
    %61 = arith.truncf %60 : vector<4x16xf32> to vector<4x16xbf16>
    %c0_33 = arith.constant 0 : index
    %c1_34 = arith.constant 1 : index
    %62 = vector.load %arg6[%c0_33, %c1_34] : memref<4x20xbf16, #tpu.memory_space<vmem>>, vector<4x16xbf16>
    tpu.vector_store %arg6[%c0_33, %c1_34], %61 {strides = array<i32>} : memref<4x20xbf16, #tpu.memory_space<vmem>>, vector<4x16xbf16>,
    %c0_35 = arith.constant 0 : index
    %c0_36 = arith.constant 0 : index
    %63 = vector.load %arg6[%c0_35, %c0_36] : memref<4x20xbf16, #tpu.memory_space<vmem>>, vector<4x18xbf16>
    %c0_37 = arith.constant 0 : index
    %c0_38 = arith.constant 0 : index
    %64 = vector.load %arg7[%c0_37, %c0_38] : memref<12x18xbf16, #tpu.memory_space<vmem>>, vector<4x18xbf16>
    tpu.vector_store %arg7[%c0_37, %c0_38], %63 {strides = array<i32>} : memref<12x18xbf16, #tpu.memory_space<vmem>>, vector<4x18xbf16>,
    %c0_39 = arith.constant 0 : index
    %c1_40 = arith.constant 1 : index
    %65 = vector.load %arg6[%c0_39, %c1_40] : memref<4x20xbf16, #tpu.memory_space<vmem>>, vector<4x18xbf16>
    %c4_41 = arith.constant 4 : index
    %c0_42 = arith.constant 0 : index
    %66 = vector.load %arg7[%c4_41, %c0_42] : memref<12x18xbf16, #tpu.memory_space<vmem>>, vector<4x18xbf16>
    tpu.vector_store %arg7[%c4_41, %c0_42], %65 {strides = array<i32>} : memref<12x18xbf16, #tpu.memory_space<vmem>>, vector<4x18xbf16>,
    %c0_43 = arith.constant 0 : index
    %c2_44 = arith.constant 2 : index
    %67 = vector.load %arg6[%c0_43, %c2_44] : memref<4x20xbf16, #tpu.memory_space<vmem>>, vector<4x18xbf16>
    %c8_45 = arith.constant 8 : index
    %c0_46 = arith.constant 0 : index
    %68 = vector.load %arg7[%c8_45, %c0_46] : memref<12x18xbf16, #tpu.memory_space<vmem>>, vector<4x18xbf16>
    tpu.vector_store %arg7[%c8_45, %c0_46], %67 {strides = array<i32>} : memref<12x18xbf16, #tpu.memory_space<vmem>>, vector<4x18xbf16>,
    %c0_47 = arith.constant 0 : index
    %c0_48 = arith.constant 0 : index
    %69 = vector.load %arg3[%c0_47, %c0_48] : memref<4x12xbf16, #tpu.memory_space<vmem>>, vector<4x12xbf16>
    %c0_49 = arith.constant 0 : index
    %c0_50 = arith.constant 0 : index
    %70 = vector.load %arg7[%c0_49, %c0_50] : memref<12x18xbf16, #tpu.memory_space<vmem>>, vector<12x18xbf16>
    %cst_51 = arith.constant dense<0.000000e+00> : vector<4x18xf32>
    %71 = tpu.matmul %69, %70, %cst_51 {dimension_numbers = #tpu.dot_dimension_numbers<[1], [0], [0], [1], [0, 0, 1, 1], [], []>} : vector<4x12xbf16>, vector<12x18xbf16>, vector<4x18xf32> -> vector<4x18xf32>
    %72 = vector.broadcast %4 : vector<4x1xf32> to vector<4x18xf32>
    %73 = arith.addf %71, %72 : vector<4x18xf32>
    %74 = vector.extract_strided_slice %73 {offsets = [0, 0], sizes = [4, 16], strides = [1, 1]} : vector<4x18xf32> to vector<4x16xf32>
    %75 = vector.shape_cast %74 : vector<4x16xf32> to vector<1x4x16xf32>
    %cst_52 = arith.constant dense<0.000000e+00> : vector<1xf32>
    %76 = vector.multi_reduction <add>, %75, %cst_52 [1, 2] : vector<1x4x16xf32> to vector<1xf32>
    %77 = vector.shape_cast %76 : vector<1xf32> to vector<1x1x1xf32>
    %78 = vector.extract %77[0, 0, 0] : f32 from vector<1x1x1xf32>
    %cst_53 = arith.constant 1.562500e-02 : f32
    %79 = arith.mulf %78, %cst_53 : f32
    %80 = arith.mulf %74, %74 : vector<4x16xf32>
    %81 = vector.shape_cast %80 : vector<4x16xf32> to vector<1x4x16xf32>
    %cst_54 = arith.constant dense<0.000000e+00> : vector<1xf32>
    %82 = vector.multi_reduction <add>, %81, %cst_54 [1, 2] : vector<1x4x16xf32> to vector<1xf32>
    %83 = vector.shape_cast %82 : vector<1xf32> to vector<1x1x1xf32>
    %84 = vector.extract %83[0, 0, 0] : f32 from vector<1x1x1xf32>
    %cst_55 = arith.constant 1.562500e-02 : f32
    %85 = arith.mulf %84, %cst_55 : f32
    %86 = arith.mulf %79, %79 : f32
    %87 = arith.subf %85, %86 : f32
    %cst_56 = arith.constant 0.000000e+00 : f32
    %88 = arith.maximumf %87, %cst_56 : f32
    %cst_57 = arith.constant 9.99999974E-6 : f32
    %89 = arith.addf %88, %cst_57 : f32
    %90 = math.rsqrt %89 : f32
    %91 = vector.broadcast %90 : f32 to vector<4x1xf32>
    %92 = arith.mulf %5, %91 : vector<4x1xf32>
    %93 = vector.broadcast %79 : f32 to vector<4x1xf32>
    %94 = arith.mulf %93, %92 : vector<4x1xf32>
    %95 = arith.subf %6, %94 : vector<4x1xf32>
    %96 = vector.broadcast %92 : vector<4x1xf32> to vector<4x16xf32>
    %97 = arith.mulf %74, %96 : vector<4x16xf32>
    %98 = vector.broadcast %95 : vector<4x1xf32> to vector<4x16xf32>
    %99 = arith.addf %97, %98 : vector<4x16xf32>
    %c0_58 = arith.constant 0 : index
    %c0_59 = arith.constant 0 : index
    %c0_60 = arith.constant 0 : index
    %100 = vector.load %arg1[%c0_58, %c0_59, %c0_60] : memref<1x4x16xf32, #tpu.memory_space<vmem>>, vector<1x4x16xf32>
    %101 = vector.shape_cast %100 : vector<1x4x16xf32> to vector<4x16xf32>
    %102 = arith.addf %101, %99 : vector<4x16xf32>
    %cst_61 = arith.constant 5.000000e-01 : f32
    %103 = vector.broadcast %cst_61 : f32 to vector<4x16xf32>
    %104 = arith.mulf %103, %102 : vector<4x16xf32>
    %cst_62 = arith.constant 0.707106769 : f32
    %105 = vector.broadcast %cst_62 : f32 to vector<4x16xf32>
    %106 = arith.mulf %102, %105 : vector<4x16xf32>
    %107 = math.erf %106 : vector<4x16xf32>
    %cst_63 = arith.constant 1.000000e+00 : f32
    %108 = vector.broadcast %cst_63 : f32 to vector<4x16xf32>
    %109 = arith.addf %108, %107 : vector<4x16xf32>
    %110 = arith.mulf %104, %109 : vector<4x16xf32>
    %c0_64 = arith.constant 0 : index
    %c0_65 = arith.constant 0 : index
    %c0_66 = arith.constant 0 : index
    %111 = vector.load %arg5[%c0_64, %c0_65, %c0_66] : memref<1x4x16xf32, #tpu.memory_space<vmem>>, vector<1x4x16xf32>
    %112 = vector.shape_cast %111 : vector<1x4x16xf32> to vector<4x16xf32>
    %113 = vector.shape_cast %110 : vector<4x16xf32> to vector<1x4x16xf32>
    tpu.vector_store %arg5[%c0_64, %c0_65, %c0_66], %113 {strides = array<i32>} : memref<1x4x16xf32, #tpu.memory_space<vmem>>, vector<1x4x16xf32>,
    return
  }
  func.func @transform_0(%arg0: i32) -> (i32, i32, i32) {
    %c0_i32 = arith.constant 0 : i32
    %c0_i32_0 = arith.constant 0 : i32
    %c0_i32_1 = arith.constant 0 : i32
    return %arg0, %c0_i32, %c0_i32_0 : i32, i32, i32
  }
  func.func @transform_1(%arg0: i32) -> (i32, i32) {
    %c0_i32 = arith.constant 0 : i32
    %c0_i32_0 = arith.constant 0 : i32
    %c0_i32_1 = arith.constant 0 : i32
    return %c0_i32, %c0_i32_0 : i32, i32
  }
  func.func @transform_2(%arg0: i32) -> (i32, i32) {
    %c0_i32 = arith.constant 0 : i32
    %c0_i32_0 = arith.constant 0 : i32
    %c0_i32_1 = arith.constant 0 : i32
    return %c0_i32, %c0_i32_0 : i32, i32
  }
  func.func @transform_3(%arg0: i32) -> (i32, i32) {
    %c0_i32 = arith.constant 0 : i32
    %c0_i32_0 = arith.constant 0 : i32
    %c0_i32_1 = arith.constant 0 : i32
    return %c0_i32, %c0_i32_0 : i32, i32
  }
  func.func @transform_4(%arg0: i32) -> (i32, i32, i32) {
    %c0_i32 = arith.constant 0 : i32
    %c0_i32_0 = arith.constant 0 : i32
    %c0_i32_1 = arith.constant 0 : i32
    return %arg0, %c0_i32, %c0_i32_0 : i32, i32, i32
  }
}

module attributes {stable_mosaic.version = 11 : i64} {
  func.func @_residual_block_kernel(%arg0: i32, %arg1: memref<1x4x16xf32, #tpu.memory_space<vmem>>, %arg2: memref<4x12xbf16, #tpu.memory_space<vmem>>, %arg3: memref<4x12xbf16, #tpu.memory_space<vmem>>, %arg4: memref<4x8xf32, #tpu.memory_space<vmem>>, %arg5: memref<1x4x16xf32, #tpu.memory_space<vmem>>, %arg6: memref<4x20xbf16, #tpu.memory_space<vmem>>, %arg7: memref<12x18xbf16, #tpu.memory_space<vmem>>) attributes {dimension_semantics = [#tpu.dimension_semantics<parallel>], iteration_bounds = array<i64: 2>, scalar_prefetch = 0 : i64, scratch_operands = 2 : i64, tpu.core_type = #tpu.core_type<tc>, window_params = [{transform_indices = @transform_0, window_bounds = array<i64: 1, 4, 16>}, {pipeline_mode = #tpu.pipeline_mode<synchronous>, transform_indices = @transform_1, window_bounds = array<i64: 4, 12>}, {pipeline_mode = #tpu.pipeline_mode<synchronous>, transform_indices = @transform_2, window_bounds = array<i64: 4, 12>}, {pipeline_mode = #tpu.pipeline_mode<synchronous>, transform_indices = @transform_3, window_bounds = array<i64: 4, 8>}, {transform_indices = @transform_4, window_bounds = array<i64: 1, 4, 16>}]} {
    %c0 = arith.constant 0 : index
    %c0_0 = arith.constant 0 : index
    %0 = vector.load %arg4[%c0, %c0_0] : memref<4x8xf32, #tpu.memory_space<vmem>>, vector<4x8xf32>
    %1 = vector.extract_strided_slice %0 {offsets = [0, 0], sizes = [4, 1], strides = [1, 1]} : vector<4x8xf32> to vector<4x1xf32>
    %2 = vector.extract_strided_slice %0 {offsets = [0, 1], sizes = [4, 1], strides = [1, 1]} : vector<4x8xf32> to vector<4x1xf32>
    %3 = vector.extract_strided_slice %0 {offsets = [0, 2], sizes = [4, 1], strides = [1, 1]} : vector<4x8xf32> to vector<4x1xf32>
    %4 = vector.extract_strided_slice %0 {offsets = [0, 3], sizes = [4, 1], strides = [1, 1]} : vector<4x8xf32> to vector<4x1xf32>
    %5 = vector.extract_strided_slice %0 {offsets = [0, 4], sizes = [4, 1], strides = [1, 1]} : vector<4x8xf32> to vector<4x1xf32>
    %6 = vector.extract_strided_slice %0 {offsets = [0, 5], sizes = [4, 1], strides = [1, 1]} : vector<4x8xf32> to vector<4x1xf32>
    %cst = arith.constant 0.000000e+00 : bf16
    %7 = vector.broadcast %cst : bf16 to vector<4x1xbf16>
    %c0_1 = arith.constant 0 : index
    %c0_2 = arith.constant 0 : index
    %8 = vector.load %arg6[%c0_1, %c0_2] : memref<4x20xbf16, #tpu.memory_space<vmem>>, vector<4x1xbf16>
    tpu.vector_store %arg6[%c0_1, %c0_2], %7 {strides = array<i32>} : memref<4x20xbf16, #tpu.memory_space<vmem>>, vector<4x1xbf16>,
    %c0_3 = arith.constant 0 : index
    %c19 = arith.constant 19 : index
    %9 = vector.load %arg6[%c0_3, %c19] : memref<4x20xbf16, #tpu.memory_space<vmem>>, vector<4x1xbf16>
    tpu.vector_store %arg6[%c0_3, %c19], %7 {strides = array<i32>} : memref<4x20xbf16, #tpu.memory_space<vmem>>, vector<4x1xbf16>,
    %cst_4 = arith.constant 0.000000e+00 : bf16
    %10 = vector.broadcast %cst_4 : bf16 to vector<4x2xbf16>
    %c0_5 = arith.constant 0 : index
    %c17 = arith.constant 17 : index
    %11 = vector.load %arg6[%c0_5, %c17] : memref<4x20xbf16, #tpu.memory_space<vmem>>, vector<4x2xbf16>
    tpu.vector_store %arg6[%c0_5, %c17], %10 {strides = array<i32>} : memref<4x20xbf16, #tpu.memory_space<vmem>>, vector<4x2xbf16>,
    %c0_6 = arith.constant 0 : index
    %c0_7 = arith.constant 0 : index
    %c0_8 = arith.constant 0 : index
    %12 = vector.load %arg1[%c0_6, %c0_7, %c0_8] : memref<1x4x16xf32, #tpu.memory_space<vmem>>, vector<1x4x16xf32>
    %13 = vector.shape_cast %12 : vector<1x4x16xf32> to vector<4x16xf32>
    %14 = arith.truncf %13 : vector<4x16xf32> to vector<4x16xbf16>
    %c0_9 = arith.constant 0 : index
    %c1 = arith.constant 1 : index
    %15 = vector.load %arg6[%c0_9, %c1] : memref<4x20xbf16, #tpu.memory_space<vmem>>, vector<4x16xbf16>
    tpu.vector_store %arg6[%c0_9, %c1], %14 {strides = array<i32>} : memref<4x20xbf16, #tpu.memory_space<vmem>>, vector<4x16xbf16>,
    %c0_10 = arith.constant 0 : index
    %c0_11 = arith.constant 0 : index
    %16 = vector.load %arg6[%c0_10, %c0_11] : memref<4x20xbf16, #tpu.memory_space<vmem>>, vector<4x18xbf16>
    %c0_12 = arith.constant 0 : index
    %c0_13 = arith.constant 0 : index
    %17 = vector.load %arg7[%c0_12, %c0_13] : memref<12x18xbf16, #tpu.memory_space<vmem>>, vector<4x18xbf16>
    tpu.vector_store %arg7[%c0_12, %c0_13], %16 {strides = array<i32>} : memref<12x18xbf16, #tpu.memory_space<vmem>>, vector<4x18xbf16>,
    %c0_14 = arith.constant 0 : index
    %c1_15 = arith.constant 1 : index
    %18 = vector.load %arg6[%c0_14, %c1_15] : memref<4x20xbf16, #tpu.memory_space<vmem>>, vector<4x18xbf16>
    %c4 = arith.constant 4 : index
    %c0_16 = arith.constant 0 : index
    %19 = vector.load %arg7[%c4, %c0_16] : memref<12x18xbf16, #tpu.memory_space<vmem>>, vector<4x18xbf16>
    tpu.vector_store %arg7[%c4, %c0_16], %18 {strides = array<i32>} : memref<12x18xbf16, #tpu.memory_space<vmem>>, vector<4x18xbf16>,
    %c0_17 = arith.constant 0 : index
    %c2 = arith.constant 2 : index
    %20 = vector.load %arg6[%c0_17, %c2] : memref<4x20xbf16, #tpu.memory_space<vmem>>, vector<4x18xbf16>
    %c8 = arith.constant 8 : index
    %c0_18 = arith.constant 0 : index
    %21 = vector.load %arg7[%c8, %c0_18] : memref<12x18xbf16, #tpu.memory_space<vmem>>, vector<4x18xbf16>
    tpu.vector_store %arg7[%c8, %c0_18], %20 {strides = array<i32>} : memref<12x18xbf16, #tpu.memory_space<vmem>>, vector<4x18xbf16>,
    %c0_19 = arith.constant 0 : index
    %c0_20 = arith.constant 0 : index
    %22 = vector.load %arg2[%c0_19, %c0_20] : memref<4x12xbf16, #tpu.memory_space<vmem>>, vector<4x12xbf16>
    %c0_21 = arith.constant 0 : index
    %c0_22 = arith.constant 0 : index
    %23 = vector.load %arg7[%c0_21, %c0_22] : memref<12x18xbf16, #tpu.memory_space<vmem>>, vector<12x18xbf16>
    %cst_23 = arith.constant dense<0.000000e+00> : vector<4x18xf32>
    %24 = tpu.matmul %22, %23, %cst_23 {dimension_numbers = #tpu.dot_dimension_numbers<[1], [0], [0], [1], [0, 0, 1, 1], [], []>} : vector<4x12xbf16>, vector<12x18xbf16>, vector<4x18xf32> -> vector<4x18xf32>
    %25 = vector.broadcast %1 : vector<4x1xf32> to vector<4x18xf32>
    %26 = arith.addf %24, %25 : vector<4x18xf32>
    %27 = vector.extract_strided_slice %26 {offsets = [0, 0], sizes = [4, 16], strides = [1, 1]} : vector<4x18xf32> to vector<4x16xf32>
    %28 = vector.shape_cast %27 : vector<4x16xf32> to vector<1x4x16xf32>
    %cst_24 = arith.constant dense<0.000000e+00> : vector<1xf32>
    %29 = vector.multi_reduction <add>, %28, %cst_24 [1, 2] : vector<1x4x16xf32> to vector<1xf32>
    %30 = vector.shape_cast %29 : vector<1xf32> to vector<1x1x1xf32>
    %31 = vector.extract %30[0, 0, 0] : f32 from vector<1x1x1xf32>
    %cst_25 = arith.constant 1.562500e-02 : f32
    %32 = arith.mulf %31, %cst_25 : f32
    %33 = arith.mulf %27, %27 : vector<4x16xf32>
    %34 = vector.shape_cast %33 : vector<4x16xf32> to vector<1x4x16xf32>
    %cst_26 = arith.constant dense<0.000000e+00> : vector<1xf32>
    %35 = vector.multi_reduction <add>, %34, %cst_26 [1, 2] : vector<1x4x16xf32> to vector<1xf32>
    %36 = vector.shape_cast %35 : vector<1xf32> to vector<1x1x1xf32>
    %37 = vector.extract %36[0, 0, 0] : f32 from vector<1x1x1xf32>
    %cst_27 = arith.constant 1.562500e-02 : f32
    %38 = arith.mulf %37, %cst_27 : f32
    %39 = arith.mulf %32, %32 : f32
    %40 = arith.subf %38, %39 : f32
    %cst_28 = arith.constant 0.000000e+00 : f32
    %41 = arith.maximumf %40, %cst_28 : f32
    %cst_29 = arith.constant 9.99999974E-6 : f32
    %42 = arith.addf %41, %cst_29 : f32
    %43 = math.rsqrt %42 : f32
    %44 = vector.broadcast %43 : f32 to vector<4x1xf32>
    %45 = arith.mulf %2, %44 : vector<4x1xf32>
    %46 = vector.broadcast %32 : f32 to vector<4x1xf32>
    %47 = arith.mulf %46, %45 : vector<4x1xf32>
    %48 = arith.subf %3, %47 : vector<4x1xf32>
    %49 = vector.broadcast %45 : vector<4x1xf32> to vector<4x16xf32>
    %50 = arith.mulf %27, %49 : vector<4x16xf32>
    %51 = vector.broadcast %48 : vector<4x1xf32> to vector<4x16xf32>
    %52 = arith.addf %50, %51 : vector<4x16xf32>
    %cst_30 = arith.constant 5.000000e-01 : f32
    %53 = vector.broadcast %cst_30 : f32 to vector<4x16xf32>
    %54 = arith.mulf %53, %52 : vector<4x16xf32>
    %cst_31 = arith.constant 0.707106769 : f32
    %55 = vector.broadcast %cst_31 : f32 to vector<4x16xf32>
    %56 = arith.mulf %52, %55 : vector<4x16xf32>
    %57 = math.erf %56 : vector<4x16xf32>
    %cst_32 = arith.constant 1.000000e+00 : f32
    %58 = vector.broadcast %cst_32 : f32 to vector<4x16xf32>
    %59 = arith.addf %58, %57 : vector<4x16xf32>
    %60 = arith.mulf %54, %59 : vector<4x16xf32>
    %61 = arith.truncf %60 : vector<4x16xf32> to vector<4x16xbf16>
    %c0_33 = arith.constant 0 : index
    %c1_34 = arith.constant 1 : index
    %62 = vector.load %arg6[%c0_33, %c1_34] : memref<4x20xbf16, #tpu.memory_space<vmem>>, vector<4x16xbf16>
    tpu.vector_store %arg6[%c0_33, %c1_34], %61 {strides = array<i32>} : memref<4x20xbf16, #tpu.memory_space<vmem>>, vector<4x16xbf16>,
    %c0_35 = arith.constant 0 : index
    %c0_36 = arith.constant 0 : index
    %63 = vector.load %arg6[%c0_35, %c0_36] : memref<4x20xbf16, #tpu.memory_space<vmem>>, vector<4x18xbf16>
    %c0_37 = arith.constant 0 : index
    %c0_38 = arith.constant 0 : index
    %64 = vector.load %arg7[%c0_37, %c0_38] : memref<12x18xbf16, #tpu.memory_space<vmem>>, vector<4x18xbf16>
    tpu.vector_store %arg7[%c0_37, %c0_38], %63 {strides = array<i32>} : memref<12x18xbf16, #tpu.memory_space<vmem>>, vector<4x18xbf16>,
    %c0_39 = arith.constant 0 : index
    %c1_40 = arith.constant 1 : index
    %65 = vector.load %arg6[%c0_39, %c1_40] : memref<4x20xbf16, #tpu.memory_space<vmem>>, vector<4x18xbf16>
    %c4_41 = arith.constant 4 : index
    %c0_42 = arith.constant 0 : index
    %66 = vector.load %arg7[%c4_41, %c0_42] : memref<12x18xbf16, #tpu.memory_space<vmem>>, vector<4x18xbf16>
    tpu.vector_store %arg7[%c4_41, %c0_42], %65 {strides = array<i32>} : memref<12x18xbf16, #tpu.memory_space<vmem>>, vector<4x18xbf16>,
    %c0_43 = arith.constant 0 : index
    %c2_44 = arith.constant 2 : index
    %67 = vector.load %arg6[%c0_43, %c2_44] : memref<4x20xbf16, #tpu.memory_space<vmem>>, vector<4x18xbf16>
    %c8_45 = arith.constant 8 : index
    %c0_46 = arith.constant 0 : index
    %68 = vector.load %arg7[%c8_45, %c0_46] : memref<12x18xbf16, #tpu.memory_space<vmem>>, vector<4x18xbf16>
    tpu.vector_store %arg7[%c8_45, %c0_46], %67 {strides = array<i32>} : memref<12x18xbf16, #tpu.memory_space<vmem>>, vector<4x18xbf16>,
    %c0_47 = arith.constant 0 : index
    %c0_48 = arith.constant 0 : index
    %69 = vector.load %arg3[%c0_47, %c0_48] : memref<4x12xbf16, #tpu.memory_space<vmem>>, vector<4x12xbf16>
    %c0_49 = arith.constant 0 : index
    %c0_50 = arith.constant 0 : index
    %70 = vector.load %arg7[%c0_49, %c0_50] : memref<12x18xbf16, #tpu.memory_space<vmem>>, vector<12x18xbf16>
    %cst_51 = arith.constant dense<0.000000e+00> : vector<4x18xf32>
    %71 = tpu.matmul %69, %70, %cst_51 {dimension_numbers = #tpu.dot_dimension_numbers<[1], [0], [0], [1], [0, 0, 1, 1], [], []>} : vector<4x12xbf16>, vector<12x18xbf16>, vector<4x18xf32> -> vector<4x18xf32>
    %72 = vector.broadcast %4 : vector<4x1xf32> to vector<4x18xf32>
    %73 = arith.addf %71, %72 : vector<4x18xf32>
    %74 = vector.extract_strided_slice %73 {offsets = [0, 0], sizes = [4, 16], strides = [1, 1]} : vector<4x18xf32> to vector<4x16xf32>
    %75 = vector.shape_cast %74 : vector<4x16xf32> to vector<1x4x16xf32>
    %cst_52 = arith.constant dense<0.000000e+00> : vector<1xf32>
    %76 = vector.multi_reduction <add>, %75, %cst_52 [1, 2] : vector<1x4x16xf32> to vector<1xf32>
    %77 = vector.shape_cast %76 : vector<1xf32> to vector<1x1x1xf32>
    %78 = vector.extract %77[0, 0, 0] : f32 from vector<1x1x1xf32>
    %cst_53 = arith.constant 1.562500e-02 : f32
    %79 = arith.mulf %78, %cst_53 : f32
    %80 = arith.mulf %74, %74 : vector<4x16xf32>
    %81 = vector.shape_cast %80 : vector<4x16xf32> to vector<1x4x16xf32>
    %cst_54 = arith.constant dense<0.000000e+00> : vector<1xf32>
    %82 = vector.multi_reduction <add>, %81, %cst_54 [1, 2] : vector<1x4x16xf32> to vector<1xf32>
    %83 = vector.shape_cast %82 : vector<1xf32> to vector<1x1x1xf32>
    %84 = vector.extract %83[0, 0, 0] : f32 from vector<1x1x1xf32>
    %cst_55 = arith.constant 1.562500e-02 : f32
    %85 = arith.mulf %84, %cst_55 : f32
    %86 = arith.mulf %79, %79 : f32
    %87 = arith.subf %85, %86 : f32
    %cst_56 = arith.constant 0.000000e+00 : f32
    %88 = arith.maximumf %87, %cst_56 : f32
    %cst_57 = arith.constant 9.99999974E-6 : f32
    %89 = arith.addf %88, %cst_57 : f32
    %90 = math.rsqrt %89 : f32
    %91 = vector.broadcast %90 : f32 to vector<4x1xf32>
    %92 = arith.mulf %5, %91 : vector<4x1xf32>
    %93 = vector.broadcast %79 : f32 to vector<4x1xf32>
    %94 = arith.mulf %93, %92 : vector<4x1xf32>
    %95 = arith.subf %6, %94 : vector<4x1xf32>
    %96 = vector.broadcast %92 : vector<4x1xf32> to vector<4x16xf32>
    %97 = arith.mulf %74, %96 : vector<4x16xf32>
    %98 = vector.broadcast %95 : vector<4x1xf32> to vector<4x16xf32>
    %99 = arith.addf %97, %98 : vector<4x16xf32>
    %c0_58 = arith.constant 0 : index
    %c0_59 = arith.constant 0 : index
    %c0_60 = arith.constant 0 : index
    %100 = vector.load %arg1[%c0_58, %c0_59, %c0_60] : memref<1x4x16xf32, #tpu.memory_space<vmem>>, vector<1x4x16xf32>
    %101 = vector.shape_cast %100 : vector<1x4x16xf32> to vector<4x16xf32>
    %102 = arith.addf %101, %99 : vector<4x16xf32>
    %cst_61 = arith.constant 5.000000e-01 : f32
    %103 = vector.broadcast %cst_61 : f32 to vector<4x16xf32>
    %104 = arith.mulf %103, %102 : vector<4x16xf32>
    %cst_62 = arith.constant 0.707106769 : f32
    %105 = vector.broadcast %cst_62 : f32 to vector<4x16xf32>
    %106 = arith.mulf %102, %105 : vector<4x16xf32>
    %107 = math.erf %106 : vector<4x16xf32>
    %cst_63 = arith.constant 1.000000e+00 : f32
    %108 = vector.broadcast %cst_63 : f32 to vector<4x16xf32>
    %109 = arith.addf %108, %107 : vector<4x16xf32>
    %110 = arith.mulf %104, %109 : vector<4x16xf32>
    %c0_64 = arith.constant 0 : index
    %c0_65 = arith.constant 0 : index
    %c0_66 = arith.constant 0 : index
    %111 = vector.load %arg5[%c0_64, %c0_65, %c0_66] : memref<1x4x16xf32, #tpu.memory_space<vmem>>, vector<1x4x16xf32>
    %112 = vector.shape_cast %111 : vector<1x4x16xf32> to vector<4x16xf32>
    %113 = vector.shape_cast %110 : vector<4x16xf32> to vector<1x4x16xf32>
    tpu.vector_store %arg5[%c0_64, %c0_65, %c0_66], %113 {strides = array<i32>} : memref<1x4x16xf32, #tpu.memory_space<vmem>>, vector<1x4x16xf32>,
    return
  }
  func.func @transform_0(%arg0: i32) -> (i32, i32, i32) {
    %c0_i32 = arith.constant 0 : i32
    %c0_i32_0 = arith.constant 0 : i32
    %c0_i32_1 = arith.constant 0 : i32
    return %arg0, %c0_i32, %c0_i32_0 : i32, i32, i32
  }
  func.func @transform_1(%arg0: i32) -> (i32, i32) {
    %c0_i32 = arith.constant 0 : i32
    %c0_i32_0 = arith.constant 0 : i32
    %c0_i32_1 = arith.constant 0 : i32
    return %c0_i32, %c0_i32_0 : i32, i32
  }
  func.func @transform_2(%arg0: i32) -> (i32, i32) {
    %c0_i32 = arith.constant 0 : i32
    %c0_i32_0 = arith.constant 0 : i32
    %c0_i32_1 = arith.constant 0 : i32
    return %c0_i32, %c0_i32_0 : i32, i32
  }
  func.func @transform_3(%arg0: i32) -> (i32, i32) {
    %c0_i32 = arith.constant 0 : i32
    %c0_i32_0 = arith.constant 0 : i32
    %c0_i32_1 = arith.constant 0 : i32
    return %c0_i32, %c0_i32_0 : i32, i32
  }
  func.func @transform_4(%arg0: i32) -> (i32, i32, i32) {
    %c0_i32 = arith.constant 0 : i32
    %c0_i32_0 = arith.constant 0 : i32
    %c0_i32_1 = arith.constant 0 : i32
    return %arg0, %c0_i32, %c0_i32_0 : i32, i32, i32
  }
}

</mosaic_0001>

<bundles_post_ra>
// kernel: tpu_custom_call.1
= control target key start
LH: loop header
LB: loop body
LE: loop exit
PB: predicated region body
PF: predicated region fallthrough
CT: control target
= control target key end

     0   :  { %9 = vsyncpa [#allocation5], 0  ;;  %s1214_s0 = inlined_call_operand.hbm [shape: f32[2,4,16], index: 0, kind: input, shape index: {}]   ;;  %s1215_s1 = inlined_call_operand.vmem [shape: bf16[4,12], index: 1, kind: input, shape index: {}]   ;;  %s1216_s2 = inlined_call_operand.hbm [shape: bf16[4,12], index: 2, kind: input, shape index: {}]   ;;  %s1217_s3 = inlined_call_operand.vmem [shape: f32[4,8], index: 3, kind: input, shape index: {}]   ;;  %s1218_s4 = inlined_call_operand.hbm [shape: f32[2,4,16], index: 4, kind: output, shape index: {}]  }
   0x1   :  { %11 = vsyncpa [#allocation5 + $0x1], 0 }
   0x2   :  { %12 = vsyncpa [#allocation8], 0 }
   0x3   :  { %13 = vsyncpa [#allocation6], 0 }
   0x4   :  { %15 = vsyncpa [#allocation6 + $0x1], 0  ;;  %s958_s15 = smov 0   ;;  %s960_s16 = smov 0  }
   0x5   :  { %s962_s17 = smov 0   ;;  %s964_s18 = smov 0  }
   0x6 LB: > { %s979_s19 = sadd.s32 4294967295, %s915_s18   ;;  %s651_s20 = sadd.s32 4294967294, %s915_s18   ;;  %s915_s18 = sphi %s964_s18, %s1242_s18   ;;  %s911_s17 = sphi %s962_s17, %s1241_s17   ;;  %s907_s16 = sphi %s960_s16, %s1240_s16   ;;  %s903_s15 = sphi %s958_s15, %s1239_s15  }
   0x7   : > { %p41_p0 = scmp.ne.s32.totalorder %s907_s16, %s903_s15  ;;  %p1219_p1 = scmp.eq.s32.totalorder %s979_s19, 0 }
   0x8   : > { %p134_p3 = scmp.eq.s32.totalorder %s651_s20, 1  ;;  %p652_p5 = scmp.ge.s32.totalorder %s915_s18, 1 }
   0x9   : > { %p988_p4 = por %p1219_p1, %p41_p0  ;;  %p141_p7 = scmp.lt.s32.totalorder %s915_s18, 3 }
   0xa   : > { %p993_p6 = por %p134_p3, %p41_p0  ;;  %s917_s24 = smov [#allocation7]  }
   0xb   : > { %s1222_s21 = scalar_select %p988_p4, 1, 0 }
   0xc   : > { %s1223_s22 = scalar_select %p993_p6, 1, 0 }
   0xd   : > { %p998_p8 = pnand %p652_p5, %p141_p7  ;;  %s157_s25 = sshll.u32 %s917_s24, 4  ;;  %s158_s25 = int_to_ptr.vmem [resolvable:$true] %s157_s25 }
   0xe   : > { %s1006_s26 = sadd.s32 1, %s915_s18   ;;  %s28_s30 = sadd.s32 1, %s911_s17 }
   0xf   : > { %s1224_s23 = scalar_select %p998_p8, 1, 0 }
  0x10   : > { %p707_p10 = pneg %p998_p8  ;;  %s25_s28 = ssub.s32 %s915_s18, %s1006_s26 }
  0x11   : > { %p1016_p12 = scmp.eq.s32.totalorder %s25_s28, 0  ;;  %s787_s7 = scalar_lea.hbm %s1216_s2, 32 }
  0x12   : > { %p1010_p11 = pnand %p707_p10, %p1219_p1  ;;  %p788_p0 = scmp.ne.s32.totalorder %s1216_s2, %s787_s7 }
  0x13   : > { %s1226_s29 = scalar_select %p1016_p12, 1, 0 }
  0x14   : > { %p789_p3 = pneg %p1010_p11  ;;  %p794_p10 = scmp.lt.u32.totalorder %s787_s7, %s1216_s2 }
  0x16   : > { %p790_p5 = pnand %p789_p3, %p788_p0 }
  0x18   : > { %p791_p7 = pneg %p790_p5 }
  0x1a   : > { %p796_p9 = pnand %p794_p10, %p791_p7 }
  0x1c   : > { %799 = shalt.err (!%p796_p9)
}
  0x1d   : > { %s800_s12 = scalar_lea.vmem %s158_s25, 32  ;;  %p808_p6 = scmp.lt.s32.totalorder %s158_s25, %s158_s25 }
  0x1e   : > { %p801_p1 = scmp.ne.s32.totalorder %s158_s25, %s800_s12  ;;  %p809_p4 = scmp.lt.s32.totalorder %s800_s12, %s800_s12 }
  0x20   : > { %p803_p2 = pnand %p801_p1, %p789_p3  ;;  %p810_p8 = por %p809_p4, %p808_p6 }
  0x22   : > { %p804_p13 = pneg %p803_p2 }
  0x24   : > { %p811_p12 = pnand %p810_p8, %p804_p13 }
  0x26   : > { %814 = shalt.err (!%p811_p12)
}
  0x27   : > { %710 = dma.hbm_to_vmem [thread:$0]  (!%p1010_p11), %s1216_s2, 32, %s158_s25, [#allocation8]  }
  0x28   : > { %p1227_p1 = scmp.ne.s32.totalorder %s1226_s29, 0  ;;  %p36_p2 = scmp.eq.s32.totalorder %s915_s18, 0 }
  0x29   : > { %p1228_p4 = scmp.ne.s32.totalorder %s911_s17, %s907_s16  ;;  %p1229_p6 = scmp.eq.s32.totalorder %s979_s19, 1 }
  0x2a   : > { %s1042_s20 = scalar_select %p1227_p1, %s911_s17, %s28_s30  }
  0x2b   : > { %p1050_p8 = por %p1229_p6, %p1228_p4  ;;  %p720_p9 = scmp.lt.s32.totalorder %s915_s18, 2 }
  0x2c   : > { %s171_s27 = sand.u32 1, %s911_s17   ;;  %p1231_p12 = pmov %p1228_p4 }
  0x2d   : > { %s655_s28 = sshll.u32 %s171_s27, 2  ;;  %s656_s5 = sshll.u32 %s915_s18, 6 }
  0x2e   : > { %p37_p13 = por %p36_p2, %p1231_p12  ;;  %s1063_s25 = scalar_lea.hbm %s1214_s0, %s656_s5 }
  0x2f   : > { %s175_s29 = scalar_lea.vmem [#allocation4], %s655_s28  ;;  %s172_s9 = scalar_lea.sflag [#allocation5], %s171_s27 }
  0x30   : > { %s182_s30 = sshll.u32 %s175_s29, 4  ;;  %p1065_p11 = pnand %p720_p9, %p37_p13  ;;  %s1069_s30 = int_to_ptr.vmem [resolvable:$true] %s182_s30 }
  0x31   : > { %s815_s10 = scalar_lea.hbm %s1063_s25, 64  ;;  %s820_s13 = scalar_lea.hbm %s1214_s0, 128 }
  0x32   : > { %p816_p0 = scmp.ne.s32.totalorder %s1063_s25, %s815_s10  ;;  %p817_p3 = pneg %p1065_p11 }
  0x33   : > { %p821_p10 = scmp.lt.u32.totalorder %s1063_s25, %s1214_s0  ;;  %p822_p1 = scmp.lt.u32.totalorder %s820_s13, %s815_s10 }
  0x34   : > { %p818_p5 = pnand %p817_p3, %p816_p0  ;;  %p824_p4 = scmp.lt.u32.totalorder %s815_s10, %s1063_s25 }
  0x35   : > { %p823_p2 = por %p822_p1, %p821_p10 }
  0x36   : > { %p819_p7 = pneg %p818_p5 }
  0x37   : > { %p825_p6 = por %p824_p4, %p823_p2 }
  0x39   : > { %p826_p9 = pnand %p825_p6, %p819_p7 }
  0x3b   : > { %829 = shalt.err (!%p826_p9)
}
  0x3c   : > { %s830_s27 = scalar_lea.vmem %s1069_s30, 64  ;;  %s918_s5 = smov [#allocation4]  }
  0x3d   : > { %p831_p12 = scmp.ne.s32.totalorder %s1069_s30, %s830_s27  ;;  %s835_s6 = sshll.u32 %s918_s5, 4  ;;  %s836_s6 = int_to_ptr.vmem [resolvable:$false] %s835_s6 }
  0x3e   : > { %s837_s7 = scalar_lea.vmem %s836_s6, 128  ;;  %p838_p5 = scmp.lt.s32.totalorder %s1069_s30, %s836_s6 }
  0x3f   : > { %p833_p13 = pnand %p831_p12, %p817_p3  ;;  %p839_p10 = scmp.lt.s32.totalorder %s837_s7, %s830_s27 }
  0x41   : > { %p834_p0 = pneg %p833_p13  ;;  %p840_p1 = por %p839_p10, %p838_p5 }
  0x43   : > { %p841_p2 = pnand %p840_p1, %p834_p0 }
  0x45   : > { %844 = shalt.err (!%p841_p2)
}
  0x46   : > { %714 = dma.hbm_to_vmem [thread:$0]  (!%p1065_p11), %s1063_s25, 64, %s1069_s30, %s172_s9  }
  0x47   : > { %p1233_p7 = scmp.ne.s32.totalorder %s1224_s23, 0 }
  0x48   : > { %s1099_s29 = sand.u32 (!%p1233_p7), 1, %s907_s16   ;;  %p1234_p3 = scmp.ne.s32.totalorder (!%p1233_p7), %s1222_s21, 0 }
  0x49   : > { %191 = sbr.rel (%p1233_p7) target bundleno = 2139 (0x85b), region = 36  ;;  %s658_s10 = sshll.u32 (!%p1233_p7), %s1099_s29, 2 }
  0x4a   : > { %s194_s11 = scalar_lea.sflag (!%p1233_p7), [#allocation5], %s1099_s29  ;;  %s1105_s12 = scalar_lea.vmem (!%p1233_p7), [#allocation4], %s658_s10 }
  0x50   : > { %890 = dma.done.wait (%p1234_p3), %s194_s11, 64  }
  0x51   : > { %892 = vsyncadd (%p1234_p3), %s194_s11, 4294967232  ;;  %p1235_p11 = scmp.eq.s32.totalorder %s979_s19, 0 }
  0x53   : > { %894 = dma.done.wait (%p1235_p11), [#allocation8], 32   ;;  %p1236_p4 = pmov %p1235_p11 }
  0x54   : > { %v240_v0 = vlaneseq  ;;  %vm228_vm0 = vcmask 1024   ;;  %v919_v1 = vmov 1983009808   ;;  %vm230_vm1 = vcmask 156824   ;;  %v234_v7 = vld [vmem:[%s1105_s12] sm:$0xf] }
  0x55   : > { %896 = vsyncadd (%p1236_p4), [#allocation8], 4294967264  ;;  %v238_v2 = vunpack.c.l.s4 %v919_v1  ;;  %vm232_vm2 = vcmask 148616   ;;  %v920_v4 = vmov 0   ;;  %v235_v8 = vpack.c.bf16 %v234_v7, %v234_v7  ;;  %s921_s21 = smov 1   ;;  %s923_s23 = smov 126  }
  0x56   : > { %v241_v3 = vshrl.u32 %v240_v0, 7  ;;  %229 = vst.msk [vmem:[#allocation2] sm:$0x3] %vm228_vm0, %v920_v4  ;;  %769 = vset.pattern.permute.xlu1 %v920_v4  ;;  %vm247_vm3 = vcmask 132104   ;;  %v922_v11 = vmov 0.0   ;;  %vm250_vm4 = vcmask 140288  }
  0x57   : > { %v239_v5 = vunpack.c.0.s8 %v238_v2  ;;  %231 = vst.msk [vmem:[#allocation2] sm:$0x3] %vm230_vm1, %v920_v4  ;;  %675 = vmatprep.subr.bf16.mxu0 %v922_v11  ;;  %681 = vmatprep.subr.bf16.mxu1 %v922_v11  ;;  %vm924_vm5 = vmmov 0   ;;  %s925_s25 = smov 127   ;;  %v1128_v16 = vld [vmem:[%s1217_s3] sm:$0xf] }
  0x58   : > { %233 = vst.msk [vmem:[#allocation2] sm:$0x3] %vm232_vm2, %v920_v4  ;;  %677 = vmatprep.mubr.msk.bf16.mxu0 %vm924_vm5, %v922_v11  ;;  %683 = vmatprep.mubr.msk.bf16.mxu1 %vm924_vm5, %v922_v11  ;;  %vm265_vm6 = vcmask 142338   ;;  %vm297_vm7 = vcmask 1045504   ;;  %v280_v21 = vld [vmem:[%s1215_s1] sm:$0x3] }
  0x59   : > { %v1115_v6 = vsub.s32 %v239_v5, %v241_v3  ;;  %vm293_vm8 = vcmask 97280   ;;  %vm341_vm9 = vcmask 125952   ;;  %v926_v42 = vmov 1   ;;  %s927_s11 = smov 0.0  }
  0x5a   : > { %v928_v48 = vmov 2  }
  0x5b   : > { %v243_v9 = vrot.slane %v235_v8, %v1115_v6  ;;  %771 = vset.pattern.permute.xlu0 %v928_v48  ;;  %v929_v8 = vmov 3  }
  0x5d   : > { %244 = vrot.lane.b32.xlu0 %v243_v9, %s921_s21 }
  0xcf   : > { %v245_v10 = vpop.permute.xlu0 %244 }
  0xd0   : > { %248 = vst.msk [vmem:[#allocation2] sm:$0x3] %vm247_vm3, %v245_v10 }
  0xd7   : > { %v661_v12 = vld.sshfl [vmem:[#allocation2] sm:$0x3 pattern:$0x76325410] }
  0xd8   : > { %276 = vrot.lane.b32.xlu1 %v661_v12, %s923_s23  ;;  %v775_v13 = vld [vmem:[#allocation2] ss:$0 sps:$4 sm:$0x33]  }
  0xd9   : > { %v249_v14 = vld [vmem:[#allocation2] sm:$0x3]  ;;  %v261_v15 = vrot.slane %v775_v13, %v1115_v6  ;;  %v440_v13 = vld [vmem:[#allocation7] sm:$0x3] }
  0xda   : > { %251 = vst.msk [vmem:[#allocation3] sm:$0x3] %vm250_vm4, %v249_v14 }
  0xdb   : > { %262 = vrot.lane.b32.xlu0 %v261_v15, %s925_s25 }
  0xdc   : > { %285 = vperm.xlu1 %769, %v1128_v16  }
  0xe0   : > { %770 = vset.pattern.permute.xlu1 %v926_v42 }
 0x14a   : > { %v277_v17 = vpop.permute.xlu1 %276 }
 0x14b   : > { %279 = vst.msk [vmem:[#allocation3 + $0x4] sm:$0x3] %vm250_vm4, %v277_v17 }
 0x14d   : > { %v263_v18 = vpop.permute.xlu0 %262 }
 0x14e   : > { %266 = vst.msk [vmem:[#allocation3] sm:$0xc] %vm265_vm6, %v263_v18 }
 0x155   : > { %v776_v19 = vld [vmem:[#allocation3] sm:$0x3f]  }
 0x156   : > { %v299_v20 = vsel %vm297_vm7, %v776_v19, 0 }
 0x157   : > { %676 = vmatpush3.bf16.msra.mxu0 %v299_v20 }
 0x15a   : > { %678 = vmatmul.mubr.msk.bf16.vlgmr.msra.gmra.mrb[0].mxu0 %vm293_vm8, %v280_v21 }
 0x15b   : > { %v286_v22 = vpop.permute.xlu1 %285 }
 0x22d   : > { %v335_v23 = vpop.f32.mrb[0].mxu0 }
 0x22e   : > { %v336_v24 = vadd.f32 %v335_v23, %v286_v22  ;;  %v679_v25 = vpop.f32.mrb[1].mxu0 }
 0x22f   : > { %v338_v26 = vpop.f32.mrb[2].mxu0 }
 0x230   : > { %v680_v27 = vpop.f32.mrb[3].mxu0  ;;  %v342_v28 = vsel %vm341_vm9, %v336_v24, 0.0  ;;  %v353_v29 = vmul.f32 %v336_v24, %v336_v24 }
 0x231   : > { %343 = vadd.xlane.f32.xlu0 %v342_v28 }
 0x232   : > { %v354_v30 = vsel %vm341_vm9, %v353_v29, 0.0 }
 0x233   : > { %355 = vadd.xlane.f32.xlu1 %v354_v30 }
 0x2be   : > { %v344_v31 = vpop.xlane.xlu0 %343 }
 0x2bf   : > { %v345_v32 = vrot.slane %v344_v31, 4 }
 0x2c0   : > { %v356_v33 = vpop.xlane.xlu1 %355 }
 0x2c1   : > { %v346_v34 = vadd.f32 %v345_v32, %v344_v31  ;;  %v357_v35 = vrot.slane %v356_v33, 4 }
 0x2c3   : > { %v347_v36 = vrot.slane %v346_v34, 2  ;;  %v358_v37 = vadd.f32 %v357_v35, %v356_v33 }
 0x2c5   : > { %v359_v38 = vrot.slane %v358_v37, 2  ;;  %v348_v39 = vadd.f32 %v347_v36, %v346_v34  ;;  %v930_v34 = vmov 4  }
 0x2c7   : > { %v349_v40 = vrot.slane %v348_v39, 1  ;;  %v360_v41 = vadd.f32 %v359_v38, %v358_v37 }
 0x2c9   : > { %v350_v43 = vadd.f32 %v349_v40, %v348_v39  ;;  %v361_v44 = vrot.slane %v360_v41, 1  ;;  %v931_v40 = vmov 5  }
 0x2cb   : > { %687 = vpush %v350_v43  ;;  %v362_v45 = vadd.f32 %v361_v44, %v360_v41 }
 0x2cd   : > { %689 = vpush %v362_v45 }
 0x2fc   : > { %s688_s14 = spop %687 }
 0x2fd   : > { %s352_s28 = smul.f32 0.015625, %s688_s14 }
 0x2fe   : > { %s690_s27 = spop %689 }
 0x2ff   : > { %s365_s5 = smul.f32 %s352_s28, %s352_s28  ;;  %v374_v51 = vstv %s352_s28 }
 0x300   : > { %s364_s6 = smul.f32 0.015625, %s690_s27 }
 0x302   : > { %s366_s7 = ssub.f32 %s364_s6, %s365_s5 }
 0x304   : > { %s367_s30 = smax.f32 %s927_s11, %s366_s7 }
 0x305   : > { %s368_s8 = sadd.f32 1e-05, %s367_s30  ;;  %s225_s30 = scalar_lea.vmem [#allocation9], %s658_s10 }
 0x306   : > { %s932_s10 = smov [#allocation9]  }
 0x307   : > { %v369_v46 = vstv %s368_s8  ;;  %s571_s8 = sshll.u32 %s225_s30, 4  ;;  %s1171_s8 = int_to_ptr.vmem [resolvable:$true] %s571_s8 }
 0x308   : > { %779 = vrsqrt.f32 %v369_v46 }
 0x312   : > { %v780_v47 = vpop.eup %779 }
 0x313   : > { %691 = vpush %v780_v47 }
 0x344   : > { %s692_s9 = spop %691 }
 0x345   : > { %v372_v49 = vstv %s692_s9 }
 0x346   : > { %v373_v50 = vmul.f32 %v372_v49, %v1128_v16  ;;  %v549_v49 = vld [vmem:[%s1105_s12] sm:$0xf]  ;;  %s558_s12 = scalar_lea.sflag [#allocation6], %s1099_s29 }
 0x348   : > { %v375_v52 = vmul.f32 %v374_v51, %v373_v50  ;;  %383 = vperm.xlu1 %770, %v373_v50  }
 0x34a   : > { %377 = vrot.lane.b32.xlu0 %v375_v52, %s921_s21 }
 0x34c   : > { %772 = vset.pattern.permute.xlu1 %v929_v8 }
 0x3bc   : > { %v378_v53 = vpop.permute.xlu0 %377 }
 0x3bd   : > { %v380_v54 = vsub.f32 %v1128_v16, %v378_v53 }
 0x3bf   : > { %389 = vperm.xlu0 %771, %v380_v54  }
 0x3c3   : > { %774 = vset.pattern.permute.xlu0 %v931_v40 }
 0x3c7   : > { %v384_v55 = vpop.permute.xlu1 %383 }
 0x3c8   : > { %v386_v56 = vmul.f32 %v384_v55, %v336_v24 }
 0x43e   : > { %v390_v57 = vpop.permute.xlu0 %389 }
 0x43f   : > { %v392_v58 = vadd.f32 %v390_v57, %v386_v56 }
 0x441   : > { %v394_v59 = vmul.f32 0.70710677, %v392_v58  ;;  %v393_v61 = vmul.f32 0.5, %v392_v58 }
 0x443   : > { %781 = verf.f32 %v394_v59 }
 0x44d   : > { %v782_v60 = vpop.eup %781 }
 0x44e   : > { %v396_v62 = vadd.f32 1.0, %v782_v60 }
 0x450   : > { %v397_v63 = vmul.f32 %v396_v62, %v393_v61 }
 0x452   : > { %v398_v0 = vpack.c.bf16 %v397_v63, %v397_v63 }
 0x454   : > { %v406_v1 = vrot.slane %v398_v0, %v1115_v6 }
 0x456   : > { %407 = vrot.lane.b32.xlu1 %v406_v1, %s921_s21 }
 0x4c8   : > { %v408_v2 = vpop.permute.xlu1 %407 }
 0x4c9   : > { %410 = vst.msk [vmem:[#allocation2] sm:$0x3] %vm247_vm3, %v408_v2 }
 0x4d0   : > { %v664_v3 = vld.sshfl [vmem:[#allocation2] sm:$0x3 pattern:$0x76325410] }
 0x4d1   : > { %436 = vrot.lane.b32.xlu0 %v664_v3, %s923_s23  ;;  %v777_v4 = vld [vmem:[#allocation2] ss:$0 sps:$4 sm:$0x33]  }
 0x4d2   : > { %v411_v5 = vld [vmem:[#allocation2] sm:$0x3]  ;;  %v422_v7 = vrot.slane %v777_v4, %v1115_v6 }
 0x4d3   : > { %412 = vst.msk [vmem:[#allocation3] sm:$0x3] %vm250_vm4, %v411_v5 }
 0x4d4   : > { %423 = vrot.lane.b32.xlu1 %v422_v7, %s925_s25 }
 0x4d8   : > { %444 = vperm.xlu1 %772, %v1128_v16  }
 0x4dc   : > { %773 = vset.pattern.permute.xlu1 %v930_v34 }
 0x543   : > { %v437_v9 = vpop.permute.xlu0 %436 }
 0x544   : > { %439 = vst.msk [vmem:[#allocation3 + $0x4] sm:$0x3] %vm250_vm4, %v437_v9 }
 0x546   : > { %v424_v10 = vpop.permute.xlu1 %423 }
 0x547   : > { %426 = vst.msk [vmem:[#allocation3] sm:$0xc] %vm265_vm6, %v424_v10 }
 0x54e   : > { %v778_v11 = vld [vmem:[#allocation3] sm:$0x3f]  }
 0x54f   : > { %v456_v12 = vsel %vm297_vm7, %v778_v11, 0 }
 0x550   : > { %682 = vmatpush3.bf16.msra.mxu1 %v456_v12 }
 0x553   : > { %684 = vmatmul.mubr.msk.bf16.vlgmr.msra.gmra.mrb[0].mxu1 %vm293_vm8, %v440_v13 }
 0x557   : > { %v445_v6 = vpop.permute.xlu1 %444 }
 0x626   : > { %v492_v14 = vpop.f32.mrb[0].mxu1 }
 0x627   : > { %v493_v15 = vadd.f32 %v492_v14, %v445_v6  ;;  %v685_v17 = vpop.f32.mrb[1].mxu1 }
 0x628   : > { %v495_v18 = vpop.f32.mrb[2].mxu1 }
 0x629   : > { %v686_v19 = vpop.f32.mrb[3].mxu1  ;;  %v498_v20 = vsel %vm341_vm9, %v493_v15, 0.0  ;;  %v509_v21 = vmul.f32 %v493_v15, %v493_v15 }
 0x62a   : > { %499 = vadd.xlane.f32.xlu0 %v498_v20 }
 0x62b   : > { %v510_v22 = vsel %vm341_vm9, %v509_v21, 0.0 }
 0x62c   : > { %511 = vadd.xlane.f32.xlu1 %v510_v22 }
 0x6b7   : > { %v500_v23 = vpop.xlane.xlu0 %499 }
 0x6b8   : > { %v501_v24 = vrot.slane %v500_v23, 4 }
 0x6b9   : > { %v512_v25 = vpop.xlane.xlu1 %511 }
 0x6ba   : > { %v502_v26 = vadd.f32 %v501_v24, %v500_v23  ;;  %v513_v27 = vrot.slane %v512_v25, 4 }
 0x6bc   : > { %v503_v28 = vrot.slane %v502_v26, 2  ;;  %v514_v29 = vadd.f32 %v513_v27, %v512_v25 }
 0x6be   : > { %v515_v30 = vrot.slane %v514_v29, 2  ;;  %v504_v31 = vadd.f32 %v503_v28, %v502_v26 }
 0x6c0   : > { %v505_v32 = vrot.slane %v504_v31, 1  ;;  %v516_v33 = vadd.f32 %v515_v30, %v514_v29 }
 0x6c2   : > { %v506_v35 = vadd.f32 %v505_v32, %v504_v31  ;;  %v517_v36 = vrot.slane %v516_v33, 1 }
 0x6c4   : > { %693 = vpush %v506_v35  ;;  %v518_v37 = vadd.f32 %v517_v36, %v516_v33 }
 0x6c6   : > { %695 = vpush %v518_v37 }
 0x6f5   : > { %s694_s23 = spop %693 }
 0x6f6   : > { %s508_s25 = smul.f32 0.015625, %s694_s23 }
 0x6f7   : > { %s696_s13 = spop %695 }
 0x6f8   : > { %s521_s14 = smul.f32 %s508_s25, %s508_s25  ;;  %v530_v43 = vstv %s508_s25  ;;  %s849_s25 = sshll.u32 %s932_s10, 4  ;;  %s850_s25 = int_to_ptr.vmem [resolvable:$false] %s849_s25 }
 0x6f9   : > { %s520_s28 = smul.f32 0.015625, %s696_s13  ;;  %s851_s13 = scalar_lea.vmem %s850_s25, 128 }
 0x6fa   : > { %p852_p13 = scmp.lt.s32.totalorder %s1171_s8, %s850_s25 }
 0x6fb   : > { %s522_s27 = ssub.f32 %s520_s28, %s521_s14 }
 0x6fd   : > { %s523_s5 = smax.f32 %s927_s11, %s522_s27  ;;  %s668_s11 = sshll.u32 %s979_s19, 6 }
 0x6fe   : > { %s524_s6 = sadd.f32 1e-05, %s523_s5  ;;  %s1169_s23 = scalar_lea.hbm %s1218_s4, %s668_s11 }
 0x6ff   : > { %s845_s19 = scalar_lea.vmem %s1171_s8, 64 }
 0x700   : > { %v525_v38 = vstv %s524_s6  ;;  %p846_p6 = scmp.ne.s32.totalorder %s1171_s8, %s845_s19  ;;  %p853_p0 = scmp.lt.s32.totalorder %s851_s13, %s845_s19 }
 0x701   : > { %783 = vrsqrt.f32 %v525_v38 }
 0x702   : > { %p847_p9 = pnand %p846_p6, %p1050_p8  ;;  %p854_p5 = por %p853_p0, %p852_p13 }
 0x704   : > { %p848_p12 = pneg %p847_p9 }
 0x706   : > { %p855_p10 = pnand %p854_p5, %p848_p12 }
 0x70b   : > { %v784_v39 = vpop.eup %783 }
 0x70c   : > { %697 = vpush %v784_v39 }
 0x73d   : > { %s698_s7 = spop %697 }
 0x73e   : > { %v528_v41 = vstv %s698_s7 }
 0x73f   : > { %v529_v42 = vmul.f32 %v528_v41, %v1128_v16 }
 0x741   : > { %v531_v44 = vmul.f32 %v530_v43, %v529_v42  ;;  %539 = vperm.xlu1 %773, %v529_v42  }
 0x743   : > { %533 = vrot.lane.b32.xlu0 %v531_v44, %s921_s21 }
 0x7b5   : > { %v534_v45 = vpop.permute.xlu0 %533 }
 0x7b6   : > { %v536_v46 = vsub.f32 %v1128_v16, %v534_v45 }
 0x7b8   : > { %545 = vperm.xlu0 %774, %v536_v46  }
 0x7c0   : > { %v540_v47 = vpop.permute.xlu1 %539 }
 0x7c1   : > { %v542_v48 = vmul.f32 %v540_v47, %v493_v15 }
 0x837   : > { %v546_v50 = vpop.permute.xlu0 %545 }
 0x838   : > { %v548_v51 = vadd.f32 %v546_v50, %v542_v48 }
 0x83a   : > { %v550_v52 = vadd.f32 %v549_v49, %v548_v51 }
 0x83c   : > { %v552_v53 = vmul.f32 0.70710677, %v550_v52  ;;  %v551_v55 = vmul.f32 0.5, %v550_v52 }
 0x83e   : > { %785 = verf.f32 %v552_v53 }
 0x848   : > { %v786_v54 = vpop.eup %785 }
 0x849   : > { %v554_v56 = vadd.f32 1.0, %v786_v54 }
 0x84b   : > { %v555_v57 = vmul.f32 %v554_v56, %v551_v55 }
 0x84d   : > { %556 = vst.msk [vmem:[%s225_s30] sm:$0xf] %vm341_vm9, %v555_v57 }
 0x84e   : > { %858 = shalt.err (!%p855_p10)
}
 0x84f   : > { %s859_s29 = scalar_lea.hbm %s1169_s23, 64  ;;  %s863_s27 = scalar_lea.hbm %s1218_s4, 128 }
 0x850   : > { %p860_p1 = scmp.ne.s32.totalorder %s1169_s23, %s859_s29  ;;  %p864_p3 = scmp.lt.u32.totalorder %s1169_s23, %s1218_s4 }
 0x851   : > { %p865_p11 = scmp.lt.u32.totalorder %s863_s27, %s859_s29  ;;  %p867_p6 = scmp.lt.u32.totalorder %s859_s29, %s1169_s23 }
 0x852   : > { %p861_p2 = pnand %p860_p1, %p1050_p8 }
 0x853   : > { %p866_p4 = por %p865_p11, %p864_p3 }
 0x854   : > { %p862_p7 = pneg %p861_p2 }
 0x855   : > { %p868_p9 = por %p867_p6, %p866_p4 }
 0x857   : > { %p869_p12 = pnand %p868_p9, %p862_p7 }
 0x859   : > { %872 = shalt.err (!%p869_p12)
}
 0x85a   : > { %705 = dma.vmem_to_hbm [thread:$0]  (%p1050_p8), %s1171_s8, 64, %s1169_s23, %s558_s12  }
 0x85b PF: > { %s583_s7 = sand.u32 1, %s903_s15   ;;  %p1237_p13 = scmp.ne.s32.totalorder %s1223_s22, 0 }
 0x85c   : > { %p1238_p0 = scmp.ge.s32.totalorder %s915_s18, 2  ;;  %s584_s11 = scalar_lea.sflag [#allocation6], %s583_s7 }
 0x85e   : > { %p716_p5 = pnand %p1238_p0, %p1237_p13 }
 0x860   : > { %898 = dma.done.wait (!%p716_p5), %s584_s11, 64  }
 0x861   : > { %900 = vsyncadd (!%p716_p5), %s584_s11, 4294967232  ;;  %p18_p10 = scmp.ge.s32.totalorder %s1006_s26, 4   ;;  %s1239_s15 = smov %s907_s16 }
 0x862   : > { %s1240_s16 = smov %s911_s17  ;;  %s1241_s17 = smov %s1042_s20 }
 0x863   : > { %s1242_s18 = smov %s1006_s26  ;;  %20 = sbr.rel (!%p18_p10) target bundleno = 6 (0x6), region = 85 }
 0x86a   :  { %589 = vsyncpa [#allocation5], 1 }
 0x86b   :  { %591 = vsyncpa [#allocation5 + $0x1], 1 }
 0x86c   :  { %592 = vsyncpa [#allocation8], 1 }
 0x86d   :  { %593 = vsyncpa [#allocation6], 1 }
 0x86e   :  { %595 = vsyncpa [#allocation6 + $0x1], 1 }

// kernel: tpu_custom_call.1
= control target key start
LH: loop header
LB: loop body
LE: loop exit
PB: predicated region body
PF: predicated region fallthrough
CT: control target
= control target key end

     0   :  { %9 = vsyncpa [#allocation5], 0  ;;  %s1214_s0 = inlined_call_operand.hbm [shape: f32[2,4,16], index: 0, kind: input, shape index: {}]   ;;  %s1215_s1 = inlined_call_operand.vmem [shape: bf16[4,12], index: 1, kind: input, shape index: {}]   ;;  %s1216_s2 = inlined_call_operand.hbm [shape: bf16[4,12], index: 2, kind: input, shape index: {}]   ;;  %s1217_s3 = inlined_call_operand.vmem [shape: f32[4,8], index: 3, kind: input, shape index: {}]   ;;  %s1218_s4 = inlined_call_operand.hbm [shape: f32[2,4,16], index: 4, kind: output, shape index: {}]  }
   0x1   :  { %11 = vsyncpa [#allocation5 + $0x1], 0 }
   0x2   :  { %12 = vsyncpa [#allocation8], 0 }
   0x3   :  { %13 = vsyncpa [#allocation6], 0 }
   0x4   :  { %15 = vsyncpa [#allocation6 + $0x1], 0  ;;  %s958_s15 = smov 0   ;;  %s960_s16 = smov 0  }
   0x5   :  { %s962_s17 = smov 0   ;;  %s964_s18 = smov 0  }
   0x6 LB: > { %s979_s19 = sadd.s32 4294967295, %s915_s18   ;;  %s651_s20 = sadd.s32 4294967294, %s915_s18   ;;  %s915_s18 = sphi %s964_s18, %s1242_s18   ;;  %s911_s17 = sphi %s962_s17, %s1241_s17   ;;  %s907_s16 = sphi %s960_s16, %s1240_s16   ;;  %s903_s15 = sphi %s958_s15, %s1239_s15  }
   0x7   : > { %p41_p0 = scmp.ne.s32.totalorder %s907_s16, %s903_s15  ;;  %p1219_p1 = scmp.eq.s32.totalorder %s979_s19, 0 }
   0x8   : > { %p134_p3 = scmp.eq.s32.totalorder %s651_s20, 1  ;;  %p652_p5 = scmp.ge.s32.totalorder %s915_s18, 1 }
   0x9   : > { %p988_p4 = por %p1219_p1, %p41_p0  ;;  %p141_p7 = scmp.lt.s32.totalorder %s915_s18, 3 }
   0xa   : > { %p993_p6 = por %p134_p3, %p41_p0  ;;  %s917_s24 = smov [#allocation7]  }
   0xb   : > { %s1222_s21 = scalar_select %p988_p4, 1, 0 }
   0xc   : > { %s1223_s22 = scalar_select %p993_p6, 1, 0 }
   0xd   : > { %p998_p8 = pnand %p652_p5, %p141_p7  ;;  %s157_s25 = sshll.u32 %s917_s24, 4  ;;  %s158_s25 = int_to_ptr.vmem [resolvable:$true] %s157_s25 }
   0xe   : > { %s1006_s26 = sadd.s32 1, %s915_s18   ;;  %s28_s30 = sadd.s32 1, %s911_s17 }
   0xf   : > { %s1224_s23 = scalar_select %p998_p8, 1, 0 }
  0x10   : > { %p707_p10 = pneg %p998_p8  ;;  %s25_s28 = ssub.s32 %s915_s18, %s1006_s26 }
  0x11   : > { %p1016_p12 = scmp.eq.s32.totalorder %s25_s28, 0  ;;  %s787_s7 = scalar_lea.hbm %s1216_s2, 32 }
  0x12   : > { %p1010_p11 = pnand %p707_p10, %p1219_p1  ;;  %p788_p0 = scmp.ne.s32.totalorder %s1216_s2, %s787_s7 }
  0x13   : > { %s1226_s29 = scalar_select %p1016_p12, 1, 0 }
  0x14   : > { %p789_p3 = pneg %p1010_p11  ;;  %p794_p10 = scmp.lt.u32.totalorder %s787_s7, %s1216_s2 }
  0x16   : > { %p790_p5 = pnand %p789_p3, %p788_p0 }
  0x18   : > { %p791_p7 = pneg %p790_p5 }
  0x1a   : > { %p796_p9 = pnand %p794_p10, %p791_p7 }
  0x1c   : > { %799 = shalt.err (!%p796_p9)
}
  0x1d   : > { %s800_s12 = scalar_lea.vmem %s158_s25, 32  ;;  %p808_p6 = scmp.lt.s32.totalorder %s158_s25, %s158_s25 }
  0x1e   : > { %p801_p1 = scmp.ne.s32.totalorder %s158_s25, %s800_s12  ;;  %p809_p4 = scmp.lt.s32.totalorder %s800_s12, %s800_s12 }
  0x20   : > { %p803_p2 = pnand %p801_p1, %p789_p3  ;;  %p810_p8 = por %p809_p4, %p808_p6 }
  0x22   : > { %p804_p13 = pneg %p803_p2 }
  0x24   : > { %p811_p12 = pnand %p810_p8, %p804_p13 }
  0x26   : > { %814 = shalt.err (!%p811_p12)
}
  0x27   : > { %710 = dma.hbm_to_vmem [thread:$0]  (!%p1010_p11), %s1216_s2, 32, %s158_s25, [#allocation8]  }
  0x28   : > { %p1227_p1 = scmp.ne.s32.totalorder %s1226_s29, 0  ;;  %p36_p2 = scmp.eq.s32.totalorder %s915_s18, 0 }
  0x29   : > { %p1228_p4 = scmp.ne.s32.totalorder %s911_s17, %s907_s16  ;;  %p1229_p6 = scmp.eq.s32.totalorder %s979_s19, 1 }
  0x2a   : > { %s1042_s20 = scalar_select %p1227_p1, %s911_s17, %s28_s30  }
  0x2b   : > { %p1050_p8 = por %p1229_p6, %p1228_p4  ;;  %p720_p9 = scmp.lt.s32.totalorder %s915_s18, 2 }
  0x2c   : > { %s171_s27 = sand.u32 1, %s911_s17   ;;  %p1231_p12 = pmov %p1228_p4 }
  0x2d   : > { %s655_s28 = sshll.u32 %s171_s27, 2  ;;  %s656_s5 = sshll.u32 %s915_s18, 6 }
  0x2e   : > { %p37_p13 = por %p36_p2, %p1231_p12  ;;  %s1063_s25 = scalar_lea.hbm %s1214_s0, %s656_s5 }
  0x2f   : > { %s175_s29 = scalar_lea.vmem [#allocation4], %s655_s28  ;;  %s172_s9 = scalar_lea.sflag [#allocation5], %s171_s27 }
  0x30   : > { %s182_s30 = sshll.u32 %s175_s29, 4  ;;  %p1065_p11 = pnand %p720_p9, %p37_p13  ;;  %s1069_s30 = int_to_ptr.vmem [resolvable:$true] %s182_s30 }
  0x31   : > { %s815_s10 = scalar_lea.hbm %s1063_s25, 64  ;;  %s820_s13 = scalar_lea.hbm %s1214_s0, 128 }
  0x32   : > { %p816_p0 = scmp.ne.s32.totalorder %s1063_s25, %s815_s10  ;;  %p817_p3 = pneg %p1065_p11 }
  0x33   : > { %p821_p10 = scmp.lt.u32.totalorder %s1063_s25, %s1214_s0  ;;  %p822_p1 = scmp.lt.u32.totalorder %s820_s13, %s815_s10 }
  0x34   : > { %p818_p5 = pnand %p817_p3, %p816_p0  ;;  %p824_p4 = scmp.lt.u32.totalorder %s815_s10, %s1063_s25 }
  0x35   : > { %p823_p2 = por %p822_p1, %p821_p10 }
  0x36   : > { %p819_p7 = pneg %p818_p5 }
  0x37   : > { %p825_p6 = por %p824_p4, %p823_p2 }
  0x39   : > { %p826_p9 = pnand %p825_p6, %p819_p7 }
  0x3b   : > { %829 = shalt.err (!%p826_p9)
}
  0x3c   : > { %s830_s27 = scalar_lea.vmem %s1069_s30, 64  ;;  %s918_s5 = smov [#allocation4]  }
  0x3d   : > { %p831_p12 = scmp.ne.s32.totalorder %s1069_s30, %s830_s27  ;;  %s835_s6 = sshll.u32 %s918_s5, 4  ;;  %s836_s6 = int_to_ptr.vmem [resolvable:$false] %s835_s6 }
  0x3e   : > { %s837_s7 = scalar_lea.vmem %s836_s6, 128  ;;  %p838_p5 = scmp.lt.s32.totalorder %s1069_s30, %s836_s6 }
  0x3f   : > { %p833_p13 = pnand %p831_p12, %p817_p3  ;;  %p839_p10 = scmp.lt.s32.totalorder %s837_s7, %s830_s27 }
  0x41   : > { %p834_p0 = pneg %p833_p13  ;;  %p840_p1 = por %p839_p10, %p838_p5 }
  0x43   : > { %p841_p2 = pnand %p840_p1, %p834_p0 }
  0x45   : > { %844 = shalt.err (!%p841_p2)
}
  0x46   : > { %714 = dma.hbm_to_vmem [thread:$0]  (!%p1065_p11), %s1063_s25, 64, %s1069_s30, %s172_s9  }
  0x47   : > { %p1233_p7 = scmp.ne.s32.totalorder %s1224_s23, 0 }
  0x48   : > { %s1099_s29 = sand.u32 (!%p1233_p7), 1, %s907_s16   ;;  %p1234_p3 = scmp.ne.s32.totalorder (!%p1233_p7), %s1222_s21, 0 }
  0x49   : > { %191 = sbr.rel (%p1233_p7) target bundleno = 2139 (0x85b), region = 36  ;;  %s658_s10 = sshll.u32 (!%p1233_p7), %s1099_s29, 2 }
  0x4a   : > { %s194_s11 = scalar_lea.sflag (!%p1233_p7), [#allocation5], %s1099_s29  ;;  %s1105_s12 = scalar_lea.vmem (!%p1233_p7), [#allocation4], %s658_s10 }
  0x50   : > { %890 = dma.done.wait (%p1234_p3), %s194_s11, 64  }
  0x51   : > { %892 = vsyncadd (%p1234_p3), %s194_s11, 4294967232  ;;  %p1235_p11 = scmp.eq.s32.totalorder %s979_s19, 0 }
  0x53   : > { %894 = dma.done.wait (%p1235_p11), [#allocation8], 32   ;;  %p1236_p4 = pmov %p1235_p11 }
  0x54   : > { %v240_v0 = vlaneseq  ;;  %vm228_vm0 = vcmask 1024   ;;  %v919_v1 = vmov 1983009808   ;;  %vm230_vm1 = vcmask 156824   ;;  %v234_v7 = vld [vmem:[%s1105_s12] sm:$0xf] }
  0x55   : > { %896 = vsyncadd (%p1236_p4), [#allocation8], 4294967264  ;;  %v238_v2 = vunpack.c.l.s4 %v919_v1  ;;  %vm232_vm2 = vcmask 148616   ;;  %v920_v4 = vmov 0   ;;  %v235_v8 = vpack.c.bf16 %v234_v7, %v234_v7  ;;  %s921_s21 = smov 1   ;;  %s923_s23 = smov 126  }
  0x56   : > { %v241_v3 = vshrl.u32 %v240_v0, 7  ;;  %229 = vst.msk [vmem:[#allocation2] sm:$0x3] %vm228_vm0, %v920_v4  ;;  %769 = vset.pattern.permute.xlu1 %v920_v4  ;;  %vm247_vm3 = vcmask 132104   ;;  %v922_v11 = vmov 0.0   ;;  %vm250_vm4 = vcmask 140288  }
  0x57   : > { %v239_v5 = vunpack.c.0.s8 %v238_v2  ;;  %231 = vst.msk [vmem:[#allocation2] sm:$0x3] %vm230_vm1, %v920_v4  ;;  %675 = vmatprep.subr.bf16.mxu0 %v922_v11  ;;  %681 = vmatprep.subr.bf16.mxu1 %v922_v11  ;;  %vm924_vm5 = vmmov 0   ;;  %s925_s25 = smov 127   ;;  %v1128_v16 = vld [vmem:[%s1217_s3] sm:$0xf] }
  0x58   : > { %233 = vst.msk [vmem:[#allocation2] sm:$0x3] %vm232_vm2, %v920_v4  ;;  %677 = vmatprep.mubr.msk.bf16.mxu0 %vm924_vm5, %v922_v11  ;;  %683 = vmatprep.mubr.msk.bf16.mxu1 %vm924_vm5, %v922_v11  ;;  %vm265_vm6 = vcmask 142338   ;;  %vm297_vm7 = vcmask 1045504   ;;  %v280_v21 = vld [vmem:[%s1215_s1] sm:$0x3] }
  0x59   : > { %v1115_v6 = vsub.s32 %v239_v5, %v241_v3  ;;  %vm293_vm8 = vcmask 97280   ;;  %vm341_vm9 = vcmask 125952   ;;  %v926_v42 = vmov 1   ;;  %s927_s11 = smov 0.0  }
  0x5a   : > { %v928_v48 = vmov 2  }
  0x5b   : > { %v243_v9 = vrot.slane %v235_v8, %v1115_v6  ;;  %771 = vset.pattern.permute.xlu0 %v928_v48  ;;  %v929_v8 = vmov 3  }
  0x5d   : > { %244 = vrot.lane.b32.xlu0 %v243_v9, %s921_s21 }
  0xcf   : > { %v245_v10 = vpop.permute.xlu0 %244 }
  0xd0   : > { %248 = vst.msk [vmem:[#allocation2] sm:$0x3] %vm247_vm3, %v245_v10 }
  0xd7   : > { %v661_v12 = vld.sshfl [vmem:[#allocation2] sm:$0x3 pattern:$0x76325410] }
  0xd8   : > { %276 = vrot.lane.b32.xlu1 %v661_v12, %s923_s23  ;;  %v775_v13 = vld [vmem:[#allocation2] ss:$0 sps:$4 sm:$0x33]  }
  0xd9   : > { %v249_v14 = vld [vmem:[#allocation2] sm:$0x3]  ;;  %v261_v15 = vrot.slane %v775_v13, %v1115_v6  ;;  %v440_v13 = vld [vmem:[#allocation7] sm:$0x3] }
  0xda   : > { %251 = vst.msk [vmem:[#allocation3] sm:$0x3] %vm250_vm4, %v249_v14 }
  0xdb   : > { %262 = vrot.lane.b32.xlu0 %v261_v15, %s925_s25 }
  0xdc   : > { %285 = vperm.xlu1 %769, %v1128_v16  }
  0xe0   : > { %770 = vset.pattern.permute.xlu1 %v926_v42 }
 0x14a   : > { %v277_v17 = vpop.permute.xlu1 %276 }
 0x14b   : > { %279 = vst.msk [vmem:[#allocation3 + $0x4] sm:$0x3] %vm250_vm4, %v277_v17 }
 0x14d   : > { %v263_v18 = vpop.permute.xlu0 %262 }
 0x14e   : > { %266 = vst.msk [vmem:[#allocation3] sm:$0xc] %vm265_vm6, %v263_v18 }
 0x155   : > { %v776_v19 = vld [vmem:[#allocation3] sm:$0x3f]  }
 0x156   : > { %v299_v20 = vsel %vm297_vm7, %v776_v19, 0 }
 0x157   : > { %676 = vmatpush3.bf16.msra.mxu0 %v299_v20 }
 0x15a   : > { %678 = vmatmul.mubr.msk.bf16.vlgmr.msra.gmra.mrb[0].mxu0 %vm293_vm8, %v280_v21 }
 0x15b   : > { %v286_v22 = vpop.permute.xlu1 %285 }
 0x22d   : > { %v335_v23 = vpop.f32.mrb[0].mxu0 }
 0x22e   : > { %v336_v24 = vadd.f32 %v335_v23, %v286_v22  ;;  %v679_v25 = vpop.f32.mrb[1].mxu0 }
 0x22f   : > { %v338_v26 = vpop.f32.mrb[2].mxu0 }
 0x230   : > { %v680_v27 = vpop.f32.mrb[3].mxu0  ;;  %v342_v28 = vsel %vm341_vm9, %v336_v24, 0.0  ;;  %v353_v29 = vmul.f32 %v336_v24, %v336_v24 }
 0x231   : > { %343 = vadd.xlane.f32.xlu0 %v342_v28 }
 0x232   : > { %v354_v30 = vsel %vm341_vm9, %v353_v29, 0.0 }
 0x233   : > { %355 = vadd.xlane.f32.xlu1 %v354_v30 }
 0x2be   : > { %v344_v31 = vpop.xlane.xlu0 %343 }
 0x2bf   : > { %v345_v32 = vrot.slane %v344_v31, 4 }
 0x2c0   : > { %v356_v33 = vpop.xlane.xlu1 %355 }
 0x2c1   : > { %v346_v34 = vadd.f32 %v345_v32, %v344_v31  ;;  %v357_v35 = vrot.slane %v356_v33, 4 }
 0x2c3   : > { %v347_v36 = vrot.slane %v346_v34, 2  ;;  %v358_v37 = vadd.f32 %v357_v35, %v356_v33 }
 0x2c5   : > { %v359_v38 = vrot.slane %v358_v37, 2  ;;  %v348_v39 = vadd.f32 %v347_v36, %v346_v34  ;;  %v930_v34 = vmov 4  }
 0x2c7   : > { %v349_v40 = vrot.slane %v348_v39, 1  ;;  %v360_v41 = vadd.f32 %v359_v38, %v358_v37 }
 0x2c9   : > { %v350_v43 = vadd.f32 %v349_v40, %v348_v39  ;;  %v361_v44 = vrot.slane %v360_v41, 1  ;;  %v931_v40 = vmov 5  }
 0x2cb   : > { %687 = vpush %v350_v43  ;;  %v362_v45 = vadd.f32 %v361_v44, %v360_v41 }
 0x2cd   : > { %689 = vpush %v362_v45 }
 0x2fc   : > { %s688_s14 = spop %687 }
 0x2fd   : > { %s352_s28 = smul.f32 0.015625, %s688_s14 }
 0x2fe   : > { %s690_s27 = spop %689 }
 0x2ff   : > { %s365_s5 = smul.f32 %s352_s28, %s352_s28  ;;  %v374_v51 = vstv %s352_s28 }
 0x300   : > { %s364_s6 = smul.f32 0.015625, %s690_s27 }
 0x302   : > { %s366_s7 = ssub.f32 %s364_s6, %s365_s5 }
 0x304   : > { %s367_s30 = smax.f32 %s927_s11, %s366_s7 }
 0x305   : > { %s368_s8 = sadd.f32 1e-05, %s367_s30  ;;  %s225_s30 = scalar_lea.vmem [#allocation9], %s658_s10 }
 0x306   : > { %s932_s10 = smov [#allocation9]  }
 0x307   : > { %v369_v46 = vstv %s368_s8  ;;  %s571_s8 = sshll.u32 %s225_s30, 4  ;;  %s1171_s8 = int_to_ptr.vmem [resolvable:$true] %s571_s8 }
 0x308   : > { %779 = vrsqrt.f32 %v369_v46 }
 0x312   : > { %v780_v47 = vpop.eup %779 }
 0x313   : > { %691 = vpush %v780_v47 }
 0x344   : > { %s692_s9 = spop %691 }
 0x345   : > { %v372_v49 = vstv %s692_s9 }
 0x346   : > { %v373_v50 = vmul.f32 %v372_v49, %v1128_v16  ;;  %v549_v49 = vld [vmem:[%s1105_s12] sm:$0xf]  ;;  %s558_s12 = scalar_lea.sflag [#allocation6], %s1099_s29 }
 0x348   : > { %v375_v52 = vmul.f32 %v374_v51, %v373_v50  ;;  %383 = vperm.xlu1 %770, %v373_v50  }
 0x34a   : > { %377 = vrot.lane.b32.xlu0 %v375_v52, %s921_s21 }
 0x34c   : > { %772 = vset.pattern.permute.xlu1 %v929_v8 }
 0x3bc   : > { %v378_v53 = vpop.permute.xlu0 %377 }
 0x3bd   : > { %v380_v54 = vsub.f32 %v1128_v16, %v378_v53 }
 0x3bf   : > { %389 = vperm.xlu0 %771, %v380_v54  }
 0x3c3   : > { %774 = vset.pattern.permute.xlu0 %v931_v40 }
 0x3c7   : > { %v384_v55 = vpop.permute.xlu1 %383 }
 0x3c8   : > { %v386_v56 = vmul.f32 %v384_v55, %v336_v24 }
 0x43e   : > { %v390_v57 = vpop.permute.xlu0 %389 }
 0x43f   : > { %v392_v58 = vadd.f32 %v390_v57, %v386_v56 }
 0x441   : > { %v394_v59 = vmul.f32 0.70710677, %v392_v58  ;;  %v393_v61 = vmul.f32 0.5, %v392_v58 }
 0x443   : > { %781 = verf.f32 %v394_v59 }
 0x44d   : > { %v782_v60 = vpop.eup %781 }
 0x44e   : > { %v396_v62 = vadd.f32 1.0, %v782_v60 }
 0x450   : > { %v397_v63 = vmul.f32 %v396_v62, %v393_v61 }
 0x452   : > { %v398_v0 = vpack.c.bf16 %v397_v63, %v397_v63 }
 0x454   : > { %v406_v1 = vrot.slane %v398_v0, %v1115_v6 }
 0x456   : > { %407 = vrot.lane.b32.xlu1 %v406_v1, %s921_s21 }
 0x4c8   : > { %v408_v2 = vpop.permute.xlu1 %407 }
 0x4c9   : > { %410 = vst.msk [vmem:[#allocation2] sm:$0x3] %vm247_vm3, %v408_v2 }
 0x4d0   : > { %v664_v3 = vld.sshfl [vmem:[#allocation2] sm:$0x3 pattern:$0x76325410] }
 0x4d1   : > { %436 = vrot.lane.b32.xlu0 %v664_v3, %s923_s23  ;;  %v777_v4 = vld [vmem:[#allocation2] ss:$0 sps:$4 sm:$0x33]  }
 0x4d2   : > { %v411_v5 = vld [vmem:[#allocation2] sm:$0x3]  ;;  %v422_v7 = vrot.slane %v777_v4, %v1115_v6 }
 0x4d3   : > { %412 = vst.msk [vmem:[#allocation3] sm:$0x3] %vm250_vm4, %v411_v5 }
 0x4d4   : > { %423 = vrot.lane.b32.xlu1 %v422_v7, %s925_s25 }
 0x4d8   : > { %444 = vperm.xlu1 %772, %v1128_v16  }
 0x4dc   : > { %773 = vset.pattern.permute.xlu1 %v930_v34 }
 0x543   : > { %v437_v9 = vpop.permute.xlu0 %436 }
 0x544   : > { %439 = vst.msk [vmem:[#allocation3 + $0x4] sm:$0x3] %vm250_vm4, %v437_v9 }
 0x546   : > { %v424_v10 = vpop.permute.xlu1 %423 }
 0x547   : > { %426 = vst.msk [vmem:[#allocation3] sm:$0xc] %vm265_vm6, %v424_v10 }
 0x54e   : > { %v778_v11 = vld [vmem:[#allocation3] sm:$0x3f]  }
 0x54f   : > { %v456_v12 = vsel %vm297_vm7, %v778_v11, 0 }
 0x550   : > { %682 = vmatpush3.bf16.msra.mxu1 %v456_v12 }
 0x553   : > { %684 = vmatmul.mubr.msk.bf16.vlgmr.msra.gmra.mrb[0].mxu1 %vm293_vm8, %v440_v13 }
 0x557   : > { %v445_v6 = vpop.permute.xlu1 %444 }
 0x626   : > { %v492_v14 = vpop.f32.mrb[0].mxu1 }
 0x627   : > { %v493_v15 = vadd.f32 %v492_v14, %v445_v6  ;;  %v685_v17 = vpop.f32.mrb[1].mxu1 }
 0x628   : > { %v495_v18 = vpop.f32.mrb[2].mxu1 }
 0x629   : > { %v686_v19 = vpop.f32.mrb[3].mxu1  ;;  %v498_v20 = vsel %vm341_vm9, %v493_v15, 0.0  ;;  %v509_v21 = vmul.f32 %v493_v15, %v493_v15 }
 0x62a   : > { %499 = vadd.xlane.f32.xlu0 %v498_v20 }
 0x62b   : > { %v510_v22 = vsel %vm341_vm9, %v509_v21, 0.0 }
 0x62c   : > { %511 = vadd.xlane.f32.xlu1 %v510_v22 }
 0x6b7   : > { %v500_v23 = vpop.xlane.xlu0 %499 }
 0x6b8   : > { %v501_v24 = vrot.slane %v500_v23, 4 }
 0x6b9   : > { %v512_v25 = vpop.xlane.xlu1 %511 }
 0x6ba   : > { %v502_v26 = vadd.f32 %v501_v24, %v500_v23  ;;  %v513_v27 = vrot.slane %v512_v25, 4 }
 0x6bc   : > { %v503_v28 = vrot.slane %v502_v26, 2  ;;  %v514_v29 = vadd.f32 %v513_v27, %v512_v25 }
 0x6be   : > { %v515_v30 = vrot.slane %v514_v29, 2  ;;  %v504_v31 = vadd.f32 %v503_v28, %v502_v26 }
 0x6c0   : > { %v505_v32 = vrot.slane %v504_v31, 1  ;;  %v516_v33 = vadd.f32 %v515_v30, %v514_v29 }
 0x6c2   : > { %v506_v35 = vadd.f32 %v505_v32, %v504_v31  ;;  %v517_v36 = vrot.slane %v516_v33, 1 }
 0x6c4   : > { %693 = vpush %v506_v35  ;;  %v518_v37 = vadd.f32 %v517_v36, %v516_v33 }
 0x6c6   : > { %695 = vpush %v518_v37 }
 0x6f5   : > { %s694_s23 = spop %693 }
 0x6f6   : > { %s508_s25 = smul.f32 0.015625, %s694_s23 }
 0x6f7   : > { %s696_s13 = spop %695 }
 0x6f8   : > { %s521_s14 = smul.f32 %s508_s25, %s508_s25  ;;  %v530_v43 = vstv %s508_s25  ;;  %s849_s25 = sshll.u32 %s932_s10, 4  ;;  %s850_s25 = int_to_ptr.vmem [resolvable:$false] %s849_s25 }
 0x6f9   : > { %s520_s28 = smul.f32 0.015625, %s696_s13  ;;  %s851_s13 = scalar_lea.vmem %s850_s25, 128 }
 0x6fa   : > { %p852_p13 = scmp.lt.s32.totalorder %s1171_s8, %s850_s25 }
 0x6fb   : > { %s522_s27 = ssub.f32 %s520_s28, %s521_s14 }
 0x6fd   : > { %s523_s5 = smax.f32 %s927_s11, %s522_s27  ;;  %s668_s11 = sshll.u32 %s979_s19, 6 }
 0x6fe   : > { %s524_s6 = sadd.f32 1e-05, %s523_s5  ;;  %s1169_s23 = scalar_lea.hbm %s1218_s4, %s668_s11 }
 0x6ff   : > { %s845_s19 = scalar_lea.vmem %s1171_s8, 64 }
 0x700   : > { %v525_v38 = vstv %s524_s6  ;;  %p846_p6 = scmp.ne.s32.totalorder %s1171_s8, %s845_s19  ;;  %p853_p0 = scmp.lt.s32.totalorder %s851_s13, %s845_s19 }
 0x701   : > { %783 = vrsqrt.f32 %v525_v38 }
 0x702   : > { %p847_p9 = pnand %p846_p6, %p1050_p8  ;;  %p854_p5 = por %p853_p0, %p852_p13 }
 0x704   : > { %p848_p12 = pneg %p847_p9 }
 0x706   : > { %p855_p10 = pnand %p854_p5, %p848_p12 }
 0x70b   : > { %v784_v39 = vpop.eup %783 }
 0x70c   : > { %697 = vpush %v784_v39 }
 0x73d   : > { %s698_s7 = spop %697 }
 0x73e   : > { %v528_v41 = vstv %s698_s7 }
 0x73f   : > { %v529_v42 = vmul.f32 %v528_v41, %v1128_v16 }
 0x741   : > { %v531_v44 = vmul.f32 %v530_v43, %v529_v42  ;;  %539 = vperm.xlu1 %773, %v529_v42  }
 0x743   : > { %533 = vrot.lane.b32.xlu0 %v531_v44, %s921_s21 }
 0x7b5   : > { %v534_v45 = vpop.permute.xlu0 %533 }
 0x7b6   : > { %v536_v46 = vsub.f32 %v1128_v16, %v534_v45 }
 0x7b8   : > { %545 = vperm.xlu0 %774, %v536_v46  }
 0x7c0   : > { %v540_v47 = vpop.permute.xlu1 %539 }
 0x7c1   : > { %v542_v48 = vmul.f32 %v540_v47, %v493_v15 }
 0x837   : > { %v546_v50 = vpop.permute.xlu0 %545 }
 0x838   : > { %v548_v51 = vadd.f32 %v546_v50, %v542_v48 }
 0x83a   : > { %v550_v52 = vadd.f32 %v549_v49, %v548_v51 }
 0x83c   : > { %v552_v53 = vmul.f32 0.70710677, %v550_v52  ;;  %v551_v55 = vmul.f32 0.5, %v550_v52 }
 0x83e   : > { %785 = verf.f32 %v552_v53 }
 0x848   : > { %v786_v54 = vpop.eup %785 }
 0x849   : > { %v554_v56 = vadd.f32 1.0, %v786_v54 }
 0x84b   : > { %v555_v57 = vmul.f32 %v554_v56, %v551_v55 }
 0x84d   : > { %556 = vst.msk [vmem:[%s225_s30] sm:$0xf] %vm341_vm9, %v555_v57 }
 0x84e   : > { %858 = shalt.err (!%p855_p10)
}
 0x84f   : > { %s859_s29 = scalar_lea.hbm %s1169_s23, 64  ;;  %s863_s27 = scalar_lea.hbm %s1218_s4, 128 }
 0x850   : > { %p860_p1 = scmp.ne.s32.totalorder %s1169_s23, %s859_s29  ;;  %p864_p3 = scmp.lt.u32.totalorder %s1169_s23, %s1218_s4 }
 0x851   : > { %p865_p11 = scmp.lt.u32.totalorder %s863_s27, %s859_s29  ;;  %p867_p6 = scmp.lt.u32.totalorder %s859_s29, %s1169_s23 }
 0x852   : > { %p861_p2 = pnand %p860_p1, %p1050_p8 }
 0x853   : > { %p866_p4 = por %p865_p11, %p864_p3 }
 0x854   : > { %p862_p7 = pneg %p861_p2 }
 0x855   : > { %p868_p9 = por %p867_p6, %p866_p4 }
 0x857   : > { %p869_p12 = pnand %p868_p9, %p862_p7 }
 0x859   : > { %872 = shalt.err (!%p869_p12)
}
 0x85a   : > { %705 = dma.vmem_to_hbm [thread:$0]  (%p1050_p8), %s1171_s8, 64, %s1169_s23, %s558_s12  }
 0x85b PF: > { %s583_s7 = sand.u32 1, %s903_s15   ;;  %p1237_p13 = scmp.ne.s32.totalorder %s1223_s22, 0 }
 0x85c   : > { %p1238_p0 = scmp.ge.s32.totalorder %s915_s18, 2  ;;  %s584_s11 = scalar_lea.sflag [#allocation6], %s583_s7 }
 0x85e   : > { %p716_p5 = pnand %p1238_p0, %p1237_p13 }
 0x860   : > { %898 = dma.done.wait (!%p716_p5), %s584_s11, 64  }
 0x861   : > { %900 = vsyncadd (!%p716_p5), %s584_s11, 4294967232  ;;  %p18_p10 = scmp.ge.s32.totalorder %s1006_s26, 4   ;;  %s1239_s15 = smov %s907_s16 }
 0x862   : > { %s1240_s16 = smov %s911_s17  ;;  %s1241_s17 = smov %s1042_s20 }
 0x863   : > { %s1242_s18 = smov %s1006_s26  ;;  %20 = sbr.rel (!%p18_p10) target bundleno = 6 (0x6), region = 85 }
 0x86a   :  { %589 = vsyncpa [#allocation5], 1 }
 0x86b   :  { %591 = vsyncpa [#allocation5 + $0x1], 1 }
 0x86c   :  { %592 = vsyncpa [#allocation8], 1 }
 0x86d   :  { %593 = vsyncpa [#allocation6], 1 }
 0x86e   :  { %595 = vsyncpa [#allocation6 + $0x1], 1 }

</bundles_post_ra>
